<compile_context>
chip_gen: v5e
topology: v5e:2x2
jax: 0.10.0
libtpu: 0.0.40
codegen_flags: <defaults>
</compile_context>

<pallas_src>
import functools
import math

import jax
import jax.numpy as jnp
from jax import lax
from jax.experimental import pallas as pl
from jax.experimental.pallas import tpu as pltpu

LANE = 128                  # TPU lane width: feature dims are zero-padded to a multiple of this
MXU_DTYPE = jnp.bfloat16    # operand dtype for projection matmuls (f32 accumulation)
LN_EPS = 1e-5


def _round_up(x, m):
    return (x + m - 1) // m * m


# ----------------------------- in-kernel helpers -----------------------------

def _mm(a, b):
    """Projection matmul on the MXU: bf16 operands, f32 accumulation."""
    return jnp.dot(a.astype(MXU_DTYPE), b.astype(MXU_DTYPE),
                   preferred_element_type=jnp.float32)


def _layernorm(x, g, b, d_real):
    """LayerNorm over the real features. Padded lanes are exactly 0, so full-width sums
    divided by d_real equal the real-width statistics (no masked lane sub-slices)."""
    inv_n = 1.0 / d_real
    mu = jnp.sum(x, axis=-1, keepdims=True) * inv_n
    ex2 = jnp.sum(x * x, axis=-1, keepdims=True) * inv_n
    var = ex2 - mu * mu
    # g/b are zero beyond d_real, so padded output columns stay exactly 0.
    return (x - mu) * lax.rsqrt(var + LN_EPS) * g + b


def _erf(x):
    # Abramowitz & Stegun 7.1.26 (|err| <= 1.5e-7); exp + EUP reciprocal, no VALU divide.
    a1, a2, a3, a4, a5 = 0.254829592, -0.284496736, 1.421413741, -1.453152027, 1.061405429
    p = 0.3275911
    s = jnp.where(x >= 0.0, 1.0, -1.0)
    z = jnp.abs(x)
    t = pl.reciprocal(1.0 + p * z, approx=True)
    poly = ((((a5 * t + a4) * t + a3) * t + a2) * t + a1) * t
    return s * (1.0 - poly * jnp.exp(-z * z))


def _gelu_exact(x):
    return 0.5 * x * (1.0 + _erf(x * (1.0 / math.sqrt(2.0))))


def _softmax_last(s):
    m = jnp.max(s, axis=-1, keepdims=True)
    p = jnp.exp(s - m)
    l = jnp.sum(p, axis=-1, keepdims=True)
    return p * pl.reciprocal(l, approx=True)   # EUP reciprocal instead of a VPU divide


def _mha(q3, k3, v3, scale, causal, heads):
    """q3 (Tq, H, dh), k3/v3 (Tk, H, dh) -> concat-head output (Tq, H*dh).
    One batched dot_general for scores and one for attn*V (heads as the batch dim)."""
    s = lax.dot_general(q3.astype(MXU_DTYPE), k3.astype(MXU_DTYPE),
                        (((2,), (2,)), ((1,), (1,))),
                        preferred_element_type=jnp.float32) * scale      # (H, Tq, Tk)
    if causal:
        tq, tk = s.shape[1], s.shape[2]
        qi = lax.broadcasted_iota(jnp.int32, (tq, tk), 0)
        ki = lax.broadcasted_iota(jnp.int32, (tq, tk), 1)
        s = jnp.where((qi >= ki)[None], s, -1e30)
    p = _softmax_last(s)
    o = lax.dot_general(p.astype(MXU_DTYPE), v3.astype(MXU_DTYPE),
                        (((2,), (0,)), ((0,), (1,))),
                        preferred_element_type=jnp.float32)              # (H, Tq, dh)
    # concat per-head outputs -> (Tq, inner) so Wo is ONE matmul with K = inner
    return jnp.concatenate([o[h] for h in range(heads)], axis=-1)


# ----------------------------- fused decoder-stack kernel -----------------------------

def _waveai_stack_kernel(h0_ref, mem_ref, mem_w_ref, mem_b_ref,
                         ln1_g_ref, ln1_b_ref, wqkv_ref, wo_ref,
                         ln2_g_ref, ln2_b_ref, cwq_ref, cwkv_ref, cwo_ref,
                         ln3_g_ref, ln3_b_ref, w1_ref, b1_ref, w2_ref, b2_ref,
                         fin_g_ref, fin_b_ref, logit_w_ref,
                         out_ref,
                         h_sc, mem_sc,
                         *, d_real, heads, dh):
    l = pl.program_id(1)
    n_layers = pl.num_programs(1)
    inner = heads * dh
    scale = 1.0 / math.sqrt(dh)

    # Initialize the VMEM-resident hidden state and project the cross-attention memory once.
    @pl.when(l == 0)
    def _():
        h_sc[...] = h0_ref[0]
        mem_sc[...] = _mm(mem_ref[0], mem_w_ref[...]) + mem_b_ref[...]

    x = h_sc[...]                                   # (T, Dp) f32, padded lanes exactly 0
    t = x.shape[0]

    # ---- self-attention: pre-LN, fused QKV, batched heads, merged Wo, residual ----
    hn = _layernorm(x, ln1_g_ref[0], ln1_b_ref[0], d_real)
    qkv = _mm(hn, wqkv_ref[0])                      # (T, 3*inner)
    q3 = qkv[:, :inner].reshape(t, heads, dh)
    k3 = qkv[:, inner:2 * inner].reshape(t, heads, dh)
    v3 = qkv[:, 2 * inner:].reshape(t, heads, dh)
    x = x + _mm(_mha(q3, k3, v3, scale, True, heads), wo_ref[0])

    # ---- cross-attention: KV projected once per (layer, batch) from VMEM-resident memory ----
    hn = _layernorm(x, ln2_g_ref[0], ln2_b_ref[0], d_real)
    ctx = mem_sc[...]                               # (S, Dp)
    s_len = ctx.shape[0]
    q3 = _mm(hn, cwq_ref[0]).reshape(t, heads, dh)
    kv = _mm(ctx, cwkv_ref[0])                      # (S, 2*inner)
    k3 = kv[:, :inner].reshape(s_len, heads, dh)
    v3 = kv[:, inner:].reshape(s_len, heads, dh)
    x = x + _mm(_mha(q3, k3, v3, scale, False, heads), cwo_ref[0])

    # ---- FFN: pre-LN, W1 + bias, exact (erf) GELU, W2 + bias, residual ----
    hn = _layernorm(x, ln3_g_ref[0], ln3_b_ref[0], d_real)
    u = _gelu_exact(_mm(hn, w1_ref[0]) + b1_ref[0])
    x = x + _mm(u, w2_ref[0]) + b2_ref[0]

    h_sc[...] = x

    # ---- final LayerNorm + all K stacked (bias-free) logit heads, after the last layer ----
    @pl.when(l == n_layers - 1)
    def _():
        hn_f = _layernorm(x, fin_g_ref[...], fin_b_ref[...], d_real)
        out_ref[0] = _mm(hn_f, logit_w_ref[...])    # lane-dense (T, Wlog) store


# ----------------------------- parameters -----------------------------

def init_params(key, cfg):
    """Parameters in the original (unpadded, per-codebook) layout of the PyTorch module."""
    D = cfg["dim"]
    H = cfg["num_heads"]
    Dh = D // H
    inner = H * Dh
    vocab = cfg["codebook_size"] + 1
    ffd = 4 * D

    keys = iter(jax.random.split(key, 1024))

    def nrm(shape, scale=0.02):
        return scale * jax.random.normal(next(keys), shape, dtype=jnp.float32)

    params = {
        "mem_proj_w": nrm((cfg["memory_dim"], D)),
        "mem_proj_b": jnp.zeros((D,), jnp.float32),
        "tok_emb": [nrm((vocab, D)) for _ in range(cfg["codebook_count"])],
        "pos_emb": nrm((cfg["max_seq_len"], D)),
        "final_ln_g": jnp.ones((D,), jnp.float32),
        "final_ln_b": jnp.zeros((D,), jnp.float32),
        "logit_w": [nrm((D, vocab)) for _ in range(cfg["codebook_count"])],
        "layers": [],
    }
    for _ in range(cfg["depth"]):
        params["layers"].append({
            "ln1_g": jnp.ones((D,), jnp.float32), "ln1_b": jnp.zeros((D,), jnp.float32),
            "wq": nrm((D, inner)), "wk": nrm((D, inner)), "wv": nrm((D, inner)),
            "wo": nrm((inner, D)),
            "ln2_g": jnp.ones((D,), jnp.float32), "ln2_b": jnp.zeros((D,), jnp.float32),
            "cwq": nrm((D, inner)), "cwk": nrm((D, inner)), "cwv": nrm((D, inner)),
            "cwo": nrm((inner, D)),
            "ln3_g": jnp.ones((D,), jnp.float32), "ln3_b": jnp.zeros((D,), jnp.float32),
            "ff_w1": nrm((D, ffd)), "ff_b1": jnp.zeros((ffd,), jnp.float32),
            "ff_w2": nrm((ffd, D)), "ff_b2": jnp.zeros((D,), jnp.float32),
        })
    return params


def pack_params(params, cfg):
    """Pad feature dims to the 128-lane width, fuse QKV / KV weights, stack the K logit heads
    into one lane-dense matrix, stack per-layer weights on a leading `depth` axis, cast
    projection weights to bf16 once, and pre-scale the positional embedding.  Zero padding
    keeps the padded activation columns exactly 0 through every residual block."""
    D = cfg["dim"]
    K = cfg["codebook_count"]
    vocab = cfg["codebook_size"] + 1
    Dp = _round_up(D, LANE)
    Mdp = _round_up(cfg["memory_dim"], LANE)
    Fp = _round_up(4 * D, LANE)
    Wlog = _round_up(K * vocab, LANE)

    def pad_last(a, target):
        padn = target - a.shape[-1]
        return a if padn == 0 else jnp.pad(a, [(0, 0)] * (a.ndim - 1) + [(0, padn)])

    def pad_first(a, target):
        padn = target - a.shape[0]
        return a if padn == 0 else jnp.pad(a, [(0, padn)] + [(0, 0)] * (a.ndim - 1))

    def vec(a):   # (D,) -> (1, Dp)
        return pad_last(a, Dp).reshape(1, Dp)

    layers = params["layers"]

    def stackw(fn):
        return jnp.stack([fn(lp) for lp in layers], axis=0)

    packed = {
        "mem_w": pad_last(pad_first(params["mem_proj_w"], Mdp), Dp).astype(MXU_DTYPE),
        "mem_b": vec(params["mem_proj_b"]),
        "tok_emb": pad_last(jnp.concatenate(params["tok_emb"], axis=0), Dp),
        "pos_emb": pad_last(params["pos_emb"], Dp) * (D ** -0.5),     # pre-scaled abs pos emb
        "final_g": vec(params["final_ln_g"]),
        "final_b": vec(params["final_ln_b"]),
        "logit_w": jnp.pad(jnp.concatenate(params["logit_w"], axis=1),
                           [(0, Dp - D), (0, Wlog - K * vocab)]).astype(MXU_DTYPE),
        # per-layer weights stacked on a leading depth axis -> one layer DMA'd per grid step
        "ln1_g": stackw(lambda lp: vec(lp["ln1_g"])),
        "ln1_b": stackw(lambda lp: vec(lp["ln1_b"])),
        "wqkv": stackw(lambda lp: pad_first(
            jnp.concatenate([lp["wq"], lp["wk"], lp["wv"]], axis=1), Dp)).astype(MXU_DTYPE),
        "wo": stackw(lambda lp: pad_last(lp["wo"], Dp)).astype(MXU_DTYPE),
        "ln2_g": stackw(lambda lp: vec(lp["ln2_g"])),
        "ln2_b": stackw(lambda lp: vec(lp["ln2_b"])),
        "cwq": stackw(lambda lp: pad_first(lp["cwq"], Dp)).astype(MXU_DTYPE),
        "cwkv": stackw(lambda lp: pad_first(
            jnp.concatenate([lp["cwk"], lp["cwv"]], axis=1), Dp)).astype(MXU_DTYPE),
        "cwo": stackw(lambda lp: pad_last(lp["cwo"], Dp)).astype(MXU_DTYPE),
        "ln3_g": stackw(lambda lp: vec(lp["ln3_g"])),
        "ln3_b": stackw(lambda lp: vec(lp["ln3_b"])),
        "ff_w1": stackw(lambda lp: pad_last(pad_first(lp["ff_w1"], Dp), Fp)).astype(MXU_DTYPE),
        "ff_b1": stackw(lambda lp: pad_last(lp["ff_b1"].reshape(1, -1), Fp)),
        "ff_w2": stackw(lambda lp: pad_last(pad_first(lp["ff_w2"], Fp), Dp)).astype(MXU_DTYPE),
        "ff_b2": stackw(lambda lp: vec(lp["ff_b2"])),
    }
    return packed


# ----------------------------- forward pass -----------------------------

def waveai_forward(cfg, packed, x, memory,
                   x_padding_mask=None, memory_key_padding_mask=None):
    """x: (B, K, T) int32, memory: (B, S, memory_dim) -> logits (B, K, T, codebook_size + 1)."""
    # TODO(synk): x_padding_mask / memory_key_padding_mask are not applied (None in this example).
    del x_padding_mask, memory_key_padding_mask
    B, K, T = x.shape
    D = cfg["dim"]
    H = cfg["num_heads"]
    Dh = D // H
    depth = cfg["depth"]
    vocab = cfg["codebook_size"] + 1
    inner = H * Dh
    Dp = packed["pos_emb"].shape[-1]
    Mdp = packed["mem_w"].shape[0]
    F = packed["ff_w1"].shape[-1]
    Wlog = packed["logit_w"].shape[-1]
    S = memory.shape[1]

    # summed per-codebook token embeddings via ONE gather over the stacked table,
    # plus the pre-scaled absolute positional embedding (rotary_emb=False).
    offs = (jnp.arange(K, dtype=jnp.int32) * vocab)[None, :, None]
    emb = jnp.take(packed["tok_emb"], x + offs, axis=0)            # (B, K, T, Dp)
    h0 = emb.sum(axis=1) + packed["pos_emb"][:T][None, :, :]       # (B, T, Dp)

    # memory zero-padded to the lane width -> lane-dense DMA and MXU contraction
    memp = jnp.pad(memory.astype(jnp.float32),
                   [(0, 0), (0, 0), (0, Mdp - memory.shape[-1])])

    row = lambda t, d: pl.BlockSpec((1, t, d), lambda b, l: (b, 0, 0))
    per_layer = lambda s1, s2: pl.BlockSpec((1, s1, s2), lambda b, l: (l, 0, 0))
    const2 = lambda s1, s2: pl.BlockSpec((s1, s2), lambda b, l: (0, 0))

    in_specs = [
        row(T, Dp),                                     # h0
        row(S, Mdp),                                    # memory (padded)
        const2(Mdp, Dp), const2(1, Dp),                 # mem_w, mem_b
        per_layer(1, Dp), per_layer(1, Dp),             # ln1_g, ln1_b
        per_layer(Dp, 3 * inner), per_layer(inner, Dp),  # wqkv, wo
        per_layer(1, Dp), per_layer(1, Dp),             # ln2_g, ln2_b
        per_layer(Dp, inner), per_layer(Dp, 2 * inner), per_layer(inner, Dp),  # cwq, cwkv, cwo
        per_layer(1, Dp), per_layer(1, Dp),             # ln3_g, ln3_b
        per_layer(Dp, F), per_layer(1, F),              # ff_w1, ff_b1
        per_layer(F, Dp), per_layer(1, Dp),             # ff_w2, ff_b2
        const2(1, Dp), const2(1, Dp),                   # final_g, final_b
        const2(Dp, Wlog),                               # logit_w
    ]

    operands = (h0, memp, packed["mem_w"], packed["mem_b"],
                packed["ln1_g"], packed["ln1_b"], packed["wqkv"], packed["wo"],
                packed["ln2_g"], packed["ln2_b"], packed["cwq"], packed["cwkv"], packed["cwo"],
                packed["ln3_g"], packed["ln3_b"], packed["ff_w1"], packed["ff_b1"],
                packed["ff_w2"], packed["ff_b2"],
                packed["final_g"], packed["final_b"], packed["logit_w"])

    flops_layer = (2 * T * Dp * (3 * inner) + 4 * H * T * T * Dh + 2 * T * inner * Dp
                   + 2 * T * Dp * inner + 2 * S * Dp * (2 * inner) + 4 * H * T * S * Dh
                   + 2 * T * inner * Dp
                   + 4 * T * Dp * F)
    flops = B * depth * flops_layer + B * (2 * S * Mdp * Dp + 2 * T * Dp * Wlog)
    trans = B * depth * (H * T * T + H * T * S + T * F)
    nbytes = sum(int(a.size) * a.dtype.itemsize for a in operands) + B * T * Wlog * 4

    kern = functools.partial(_waveai_stack_kernel, d_real=D, heads=H, dh=Dh)
    flat = pl.pallas_call(
        kern,
        grid=(B, depth),
        in_specs=in_specs,
        out_specs=pl.BlockSpec((1, T, Wlog), lambda b, l: (b, 0, 0)),
        out_shape=jax.ShapeDtypeStruct((B, T, Wlog), jnp.float32),
        scratch_shapes=[pltpu.VMEM((T, Dp), jnp.float32),   # hidden state, resident over depth
                        pltpu.VMEM((S, Dp), jnp.float32)],  # projected memory, resident
        compiler_params=pltpu.CompilerParams(
            dimension_semantics=("parallel", "arbitrary"),   # batch across cores, depth serial
            vmem_limit_bytes=32 * 1024 * 1024,
        ),
        cost_estimate=pl.CostEstimate(flops=int(flops), transcendentals=int(trans),
                                      bytes_accessed=int(nbytes)),
    )(*operands)

    # padded logit columns never leak: slice off, then (B,T,K,vocab) -> (B,K,T,vocab)
    logits = flat[:, :, :K * vocab].reshape(B, T, K, vocab).transpose(0, 2, 1, 3)
    return logits


# ----------------------------- main -----------------------------

if __name__ == "__main__":
    cfg = dict(
        codebook_count=2,
        codebook_size=16,   # vocab per codebook = 17 (codebook_size + 1)
        max_seq_len=16,
        dim=32,
        depth=2,
        num_heads=4,
        memory_dim=24,      # != dim -> memory_proj is a real Linear
    )
    key = jax.random.PRNGKey(0)
    kp, kx, km = jax.random.split(key, 3)

    params = init_params(kp, cfg)
    packed = pack_params(params, cfg)

    B, T, S = 2, 8, 8
    x = jax.random.randint(
        kx, (B, cfg["codebook_count"], T), 0, cfg["codebook_size"] + 1, dtype=jnp.int32
    )
    memory = jax.random.normal(km, (B, S, cfg["memory_dim"]), dtype=jnp.float32)

    fwd = jax.jit(functools.partial(waveai_forward, cfg))
    out = jax.block_until_ready(fwd(packed, x, memory))

    assert out.shape == (B, cfg["codebook_count"], T, cfg["codebook_size"] + 1), out.shape
    assert out.dtype == jnp.float32
    assert bool(jnp.all(jnp.isfinite(out)))
    print("KERNEL_OK")
</pallas_src>

<mosaic_0001>
module attributes {stable_mosaic.version = 11 : i64} {
  func.func @_waveai_stack_kernel(%arg0: i32, %arg1: i32, %arg2: memref<1x8x128xf32, #tpu.memory_space<vmem>>, %arg3: memref<1x8x128xf32, #tpu.memory_space<vmem>>, %arg4: memref<128x128xbf16, #tpu.memory_space<vmem>>, %arg5: memref<1x128xf32, #tpu.memory_space<vmem>>, %arg6: memref<1x1x128xf32, #tpu.memory_space<vmem>>, %arg7: memref<1x1x128xf32, #tpu.memory_space<vmem>>, %arg8: memref<1x128x96xbf16, #tpu.memory_space<vmem>>, %arg9: memref<1x32x128xbf16, #tpu.memory_space<vmem>>, %arg10: memref<1x1x128xf32, #tpu.memory_space<vmem>>, %arg11: memref<1x1x128xf32, #tpu.memory_space<vmem>>, %arg12: memref<1x128x32xbf16, #tpu.memory_space<vmem>>, %arg13: memref<1x128x64xbf16, #tpu.memory_space<vmem>>, %arg14: memref<1x32x128xbf16, #tpu.memory_space<vmem>>, %arg15: memref<1x1x128xf32, #tpu.memory_space<vmem>>, %arg16: memref<1x1x128xf32, #tpu.memory_space<vmem>>, %arg17: memref<1x128x128xbf16, #tpu.memory_space<vmem>>, %arg18: memref<1x1x128xf32, #tpu.memory_space<vmem>>, %arg19: memref<1x128x128xbf16, #tpu.memory_space<vmem>>, %arg20: memref<1x1x128xf32, #tpu.memory_space<vmem>>, %arg21: memref<1x128xf32, #tpu.memory_space<vmem>>, %arg22: memref<1x128xf32, #tpu.memory_space<vmem>>, %arg23: memref<128x128xbf16, #tpu.memory_space<vmem>>, %arg24: memref<1x8x128xf32, #tpu.memory_space<vmem>>, %arg25: memref<8x128xf32, #tpu.memory_space<vmem>>, %arg26: memref<8x128xf32, #tpu.memory_space<vmem>>) attributes {dimension_semantics = [#tpu.dimension_semantics<parallel>, #tpu.dimension_semantics<arbitrary>], iteration_bounds = array<i64: 2, 2>, scalar_prefetch = 0 : i64, scratch_operands = 2 : i64, tpu.core_type = #tpu.core_type<tc>, window_params = [{transform_indices = @transform_0, window_bounds = array<i64: 1, 8, 128>}, {transform_indices = @transform_1, window_bounds = array<i64: 1, 8, 128>}, {pipeline_mode = #tpu.pipeline_mode<synchronous>, transform_indices = @transform_2, window_bounds = array<i64: 128, 128>}, {pipeline_mode = #tpu.pipeline_mode<synchronous>, transform_indices = @transform_3, window_bounds = array<i64: 1, 128>}, {transform_indices = @transform_4, window_bounds = array<i64: 1, 1, 128>}, {transform_indices = @transform_5, window_bounds = array<i64: 1, 1, 128>}, {transform_indices = @transform_6, window_bounds = array<i64: 1, 128, 96>}, {transform_indices = @transform_7, window_bounds = array<i64: 1, 32, 128>}, {transform_indices = @transform_8, window_bounds = array<i64: 1, 1, 128>}, {transform_indices = @transform_9, window_bounds = array<i64: 1, 1, 128>}, {transform_indices = @transform_10, window_bounds = array<i64: 1, 128, 32>}, {transform_indices = @transform_11, window_bounds = array<i64: 1, 128, 64>}, {transform_indices = @transform_12, window_bounds = array<i64: 1, 32, 128>}, {transform_indices = @transform_13, window_bounds = array<i64: 1, 1, 128>}, {transform_indices = @transform_14, window_bounds = array<i64: 1, 1, 128>}, {transform_indices = @transform_15, window_bounds = array<i64: 1, 128, 128>}, {transform_indices = @transform_16, window_bounds = array<i64: 1, 1, 128>}, {transform_indices = @transform_17, window_bounds = array<i64: 1, 128, 128>}, {transform_indices = @transform_18, window_bounds = array<i64: 1, 1, 128>}, {pipeline_mode = #tpu.pipeline_mode<synchronous>, transform_indices = @transform_19, window_bounds = array<i64: 1, 128>}, {pipeline_mode = #tpu.pipeline_mode<synchronous>, transform_indices = @transform_20, window_bounds = array<i64: 1, 128>}, {pipeline_mode = #tpu.pipeline_mode<synchronous>, transform_indices = @transform_21, window_bounds = array<i64: 128, 128>}, {transform_indices = @transform_22, window_bounds = array<i64: 1, 8, 128>}]} {
    %c0_i32 = arith.constant 0 : i32
    %0 = arith.cmpi eq, %arg1, %c0_i32 : i32
    %1 = arith.extui %0 : i1 to i32
    %c0_i32_0 = arith.constant 0 : i32
    %2 = arith.cmpi ne, %1, %c0_i32_0 : i32
    scf.if %2 {
      %c0_99 = arith.constant 0 : index
      %c0_100 = arith.constant 0 : index
      %c0_101 = arith.constant 0 : index
      %239 = vector.load %arg2[%c0_99, %c0_100, %c0_101] : memref<1x8x128xf32, #tpu.memory_space<vmem>>, vector<1x8x128xf32>
      %240 = vector.shape_cast %239 : vector<1x8x128xf32> to vector<8x128xf32>
      %c0_102 = arith.constant 0 : index
      %c0_103 = arith.constant 0 : index
      %241 = vector.load %arg25[%c0_102, %c0_103] : memref<8x128xf32, #tpu.memory_space<vmem>>, vector<8x128xf32>
      tpu.vector_store %arg25[%c0_102, %c0_103], %240 {strides = array<i32>} : memref<8x128xf32, #tpu.memory_space<vmem>>, vector<8x128xf32>,
      %c0_104 = arith.constant 0 : index
      %c0_105 = arith.constant 0 : index
      %c0_106 = arith.constant 0 : index
      %242 = vector.load %arg3[%c0_104, %c0_105, %c0_106] : memref<1x8x128xf32, #tpu.memory_space<vmem>>, vector<1x8x128xf32>
      %243 = vector.shape_cast %242 : vector<1x8x128xf32> to vector<8x128xf32>
      %c0_107 = arith.constant 0 : index
      %c0_108 = arith.constant 0 : index
      %244 = vector.load %arg4[%c0_107, %c0_108] : memref<128x128xbf16, #tpu.memory_space<vmem>>, vector<128x128xbf16>
      %245 = arith.truncf %243 : vector<8x128xf32> to vector<8x128xbf16>
      %cst_109 = arith.constant dense<0.000000e+00> : vector<8x128xf32>
      %246 = tpu.matmul %245, %244, %cst_109 {dimension_numbers = #tpu.dot_dimension_numbers<[1], [0], [0], [1], [0, 0, 1, 1], [], []>} : vector<8x128xbf16>, vector<128x128xbf16>, vector<8x128xf32> -> vector<8x128xf32>
      %c0_110 = arith.constant 0 : index
      %c0_111 = arith.constant 0 : index
      %247 = vector.load %arg5[%c0_110, %c0_111] : memref<1x128xf32, #tpu.memory_space<vmem>>, vector<1x128xf32>
      %248 = vector.broadcast %247 : vector<1x128xf32> to vector<8x128xf32>
      %249 = arith.addf %246, %248 : vector<8x128xf32>
      %c0_112 = arith.constant 0 : index
      %c0_113 = arith.constant 0 : index
      %250 = vector.load %arg26[%c0_112, %c0_113] : memref<8x128xf32, #tpu.memory_space<vmem>>, vector<8x128xf32>
      tpu.vector_store %arg26[%c0_112, %c0_113], %249 {strides = array<i32>} : memref<8x128xf32, #tpu.memory_space<vmem>>, vector<8x128xf32>,
    } else {
    }
    %c0 = arith.constant 0 : index
    %c0_1 = arith.constant 0 : index
    %3 = vector.load %arg25[%c0, %c0_1] : memref<8x128xf32, #tpu.memory_space<vmem>>, vector<8x128xf32>
    %c0_2 = arith.constant 0 : index
    %c0_3 = arith.constant 0 : index
    %c0_4 = arith.constant 0 : index
    %4 = vector.load %arg6[%c0_2, %c0_3, %c0_4] : memref<1x1x128xf32, #tpu.memory_space<vmem>>, vector<1x1x128xf32>
    %5 = vector.shape_cast %4 : vector<1x1x128xf32> to vector<1x128xf32>
    %c0_5 = arith.constant 0 : index
    %c0_6 = arith.constant 0 : index
    %c0_7 = arith.constant 0 : index
    %6 = vector.load %arg7[%c0_5, %c0_6, %c0_7] : memref<1x1x128xf32, #tpu.memory_space<vmem>>, vector<1x1x128xf32>
    %7 = vector.shape_cast %6 : vector<1x1x128xf32> to vector<1x128xf32>
    %cst = arith.constant dense<0.000000e+00> : vector<8xf32>
    %8 = vector.multi_reduction <add>, %3, %cst [1] : vector<8x128xf32> to vector<8xf32>
    %9 = vector.shape_cast %8 : vector<8xf32> to vector<8x1xf32>
    %cst_8 = arith.constant 3.125000e-02 : f32
    %10 = vector.broadcast %cst_8 : f32 to vector<8x1xf32>
    %11 = arith.mulf %9, %10 : vector<8x1xf32>
    %12 = arith.mulf %3, %3 : vector<8x128xf32>
    %cst_9 = arith.constant dense<0.000000e+00> : vector<8xf32>
    %13 = vector.multi_reduction <add>, %12, %cst_9 [1] : vector<8x128xf32> to vector<8xf32>
    %14 = vector.shape_cast %13 : vector<8xf32> to vector<8x1xf32>
    %cst_10 = arith.constant 3.125000e-02 : f32
    %15 = vector.broadcast %cst_10 : f32 to vector<8x1xf32>
    %16 = arith.mulf %14, %15 : vector<8x1xf32>
    %17 = arith.mulf %11, %11 : vector<8x1xf32>
    %18 = arith.subf %16, %17 : vector<8x1xf32>
    %19 = vector.broadcast %11 : vector<8x1xf32> to vector<8x128xf32>
    %20 = arith.subf %3, %19 : vector<8x128xf32>
    %cst_11 = arith.constant 9.99999974E-6 : f32
    %21 = vector.broadcast %cst_11 : f32 to vector<8x1xf32>
    %22 = arith.addf %18, %21 : vector<8x1xf32>
    %23 = math.rsqrt %22 : vector<8x1xf32>
    %24 = vector.broadcast %23 : vector<8x1xf32> to vector<8x128xf32>
    %25 = arith.mulf %20, %24 : vector<8x128xf32>
    %26 = vector.broadcast %5 : vector<1x128xf32> to vector<8x128xf32>
    %27 = arith.mulf %25, %26 : vector<8x128xf32>
    %28 = vector.broadcast %7 : vector<1x128xf32> to vector<8x128xf32>
    %29 = arith.addf %27, %28 : vector<8x128xf32>
    %c0_12 = arith.constant 0 : index
    %c0_13 = arith.constant 0 : index
    %c0_14 = arith.constant 0 : index
    %30 = vector.load %arg8[%c0_12, %c0_13, %c0_14] : memref<1x128x96xbf16, #tpu.memory_space<vmem>>, vector<1x128x96xbf16>
    %31 = vector.shape_cast %30 : vector<1x128x96xbf16> to vector<128x96xbf16>
    %32 = arith.truncf %29 : vector<8x128xf32> to vector<8x128xbf16>
    %cst_15 = arith.constant dense<0.000000e+00> : vector<8x96xf32>
    %33 = tpu.matmul %32, %31, %cst_15 {dimension_numbers = #tpu.dot_dimension_numbers<[1], [0], [0], [1], [0, 0, 1, 1], [], []>} : vector<8x128xbf16>, vector<128x96xbf16>, vector<8x96xf32> -> vector<8x96xf32>
    %34 = vector.extract_strided_slice %33 {offsets = [0, 0], sizes = [8, 32], strides = [1, 1]} : vector<8x96xf32> to vector<8x32xf32>
    %35 = vector.shape_cast %34 : vector<8x32xf32> to vector<8x4x8xf32>
    %36 = vector.extract_strided_slice %33 {offsets = [0, 32], sizes = [8, 32], strides = [1, 1]} : vector<8x96xf32> to vector<8x32xf32>
    %37 = vector.shape_cast %36 : vector<8x32xf32> to vector<8x4x8xf32>
    %38 = vector.extract_strided_slice %33 {offsets = [0, 64], sizes = [8, 32], strides = [1, 1]} : vector<8x96xf32> to vector<8x32xf32>
    %39 = vector.shape_cast %38 : vector<8x32xf32> to vector<8x4x8xf32>
    %40 = arith.truncf %35 : vector<8x4x8xf32> to vector<8x4x8xbf16>
    %41 = arith.truncf %37 : vector<8x4x8xf32> to vector<8x4x8xbf16>
    %cst_16 = arith.constant dense<0.000000e+00> : vector<4x8x8xf32>
    %42 = tpu.matmul %40, %41, %cst_16 {dimension_numbers = #tpu.dot_dimension_numbers<[2], [2], [0], [0], [0, 1, 0, 0, 1, 0], [1], [1]>} : vector<8x4x8xbf16>, vector<8x4x8xbf16>, vector<4x8x8xf32> -> vector<4x8x8xf32>
    %cst_17 = arith.constant 0.353553385 : f32
    %43 = vector.broadcast %cst_17 : f32 to vector<4x8x8xf32>
    %44 = arith.mulf %42, %43 : vector<4x8x8xf32>
    %45 = tpu.iota {dimensions = array<i32: 0>} : vector<8x8xi32>
    %46 = tpu.iota {dimensions = array<i32: 1>} : vector<8x8xi32>
    %47 = arith.cmpi sge, %45, %46 : vector<8x8xi32>
    %48 = vector.shape_cast %47 : vector<8x8xi1> to vector<1x8x8xi1>
    %cst_18 = arith.constant -1.000000e+30 : f32
    %49 = vector.shape_cast %48 : vector<1x8x8xi1> to vector<1x8x8xi1>
    %50 = vector.broadcast %49 : vector<1x8x8xi1> to vector<4x8x8xi1>
    %51 = vector.broadcast %cst_18 : f32 to vector<4x8x8xf32>
    %52 = arith.select %50, %44, %51 : vector<4x8x8xi1>, vector<4x8x8xf32>
    %cst_19 = arith.constant dense<0xFF800000> : vector<4x8xf32>
    %53 = vector.multi_reduction <maximumf>, %52, %cst_19 [2] : vector<4x8x8xf32> to vector<4x8xf32>
    %54 = vector.shape_cast %53 : vector<4x8xf32> to vector<4x8x1xf32>
    %55 = vector.broadcast %54 : vector<4x8x1xf32> to vector<4x8x8xf32>
    %56 = arith.subf %52, %55 : vector<4x8x8xf32>
    %57 = math.exp %56 : vector<4x8x8xf32>
    %cst_20 = arith.constant dense<0.000000e+00> : vector<4x8xf32>
    %58 = vector.multi_reduction <add>, %57, %cst_20 [2] : vector<4x8x8xf32> to vector<4x8xf32>
    %59 = vector.shape_cast %58 : vector<4x8xf32> to vector<4x8x1xf32>
    %60 = tpu.reciprocal %59 {approx = true} : vector<4x8x1xf32> -> vector<4x8x1xf32>
    %61 = vector.broadcast %60 : vector<4x8x1xf32> to vector<4x8x8xf32>
    %62 = arith.mulf %57, %61 : vector<4x8x8xf32>
    %63 = arith.truncf %62 : vector<4x8x8xf32> to vector<4x8x8xbf16>
    %64 = arith.truncf %39 : vector<8x4x8xf32> to vector<8x4x8xbf16>
    %cst_21 = arith.constant dense<0.000000e+00> : vector<4x8x8xf32>
    %65 = tpu.matmul %63, %64, %cst_21 {dimension_numbers = #tpu.dot_dimension_numbers<[2], [0], [1], [2], [0, 0, 0, 1, 1, 2], [0], [1]>} : vector<4x8x8xbf16>, vector<8x4x8xbf16>, vector<4x8x8xf32> -> vector<4x8x8xf32>
    %66 = vector.extract_strided_slice %65 {offsets = [0, 0, 0], sizes = [1, 8, 8], strides = [1, 1, 1]} : vector<4x8x8xf32> to vector<1x8x8xf32>
    %67 = vector.shape_cast %66 : vector<1x8x8xf32> to vector<8x8xf32>
    %68 = vector.extract_strided_slice %65 {offsets = [1, 0, 0], sizes = [1, 8, 8], strides = [1, 1, 1]} : vector<4x8x8xf32> to vector<1x8x8xf32>
    %69 = vector.shape_cast %68 : vector<1x8x8xf32> to vector<8x8xf32>
    %70 = vector.extract_strided_slice %65 {offsets = [2, 0, 0], sizes = [1, 8, 8], strides = [1, 1, 1]} : vector<4x8x8xf32> to vector<1x8x8xf32>
    %71 = vector.shape_cast %70 : vector<1x8x8xf32> to vector<8x8xf32>
    %72 = vector.extract_strided_slice %65 {offsets = [3, 0, 0], sizes = [1, 8, 8], strides = [1, 1, 1]} : vector<4x8x8xf32> to vector<1x8x8xf32>
    %73 = vector.shape_cast %72 : vector<1x8x8xf32> to vector<8x8xf32>
    %74 = tpu.concatenate %67, %69, %71, %73 in 1 : vector<8x8xf32>, vector<8x8xf32>, vector<8x8xf32>, vector<8x8xf32> -> vector<8x32xf32>
    %c0_22 = arith.constant 0 : index
    %c0_23 = arith.constant 0 : index
    %c0_24 = arith.constant 0 : index
    %75 = vector.load %arg9[%c0_22, %c0_23, %c0_24] : memref<1x32x128xbf16, #tpu.memory_space<vmem>>, vector<1x32x128xbf16>
    %76 = vector.shape_cast %75 : vector<1x32x128xbf16> to vector<32x128xbf16>
    %77 = arith.truncf %74 : vector<8x32xf32> to vector<8x32xbf16>
    %cst_25 = arith.constant dense<0.000000e+00> : vector<8x128xf32>
    %78 = tpu.matmul %77, %76, %cst_25 {dimension_numbers = #tpu.dot_dimension_numbers<[1], [0], [0], [1], [0, 0, 1, 1], [], []>} : vector<8x32xbf16>, vector<32x128xbf16>, vector<8x128xf32> -> vector<8x128xf32>
    %79 = arith.addf %3, %78 : vector<8x128xf32>
    %c0_26 = arith.constant 0 : index
    %c0_27 = arith.constant 0 : index
    %c0_28 = arith.constant 0 : index
    %80 = vector.load %arg10[%c0_26, %c0_27, %c0_28] : memref<1x1x128xf32, #tpu.memory_space<vmem>>, vector<1x1x128xf32>
    %81 = vector.shape_cast %80 : vector<1x1x128xf32> to vector<1x128xf32>
    %c0_29 = arith.constant 0 : index
    %c0_30 = arith.constant 0 : index
    %c0_31 = arith.constant 0 : index
    %82 = vector.load %arg11[%c0_29, %c0_30, %c0_31] : memref<1x1x128xf32, #tpu.memory_space<vmem>>, vector<1x1x128xf32>
    %83 = vector.shape_cast %82 : vector<1x1x128xf32> to vector<1x128xf32>
    %cst_32 = arith.constant dense<0.000000e+00> : vector<8xf32>
    %84 = vector.multi_reduction <add>, %79, %cst_32 [1] : vector<8x128xf32> to vector<8xf32>
    %85 = vector.shape_cast %84 : vector<8xf32> to vector<8x1xf32>
    %cst_33 = arith.constant 3.125000e-02 : f32
    %86 = vector.broadcast %cst_33 : f32 to vector<8x1xf32>
    %87 = arith.mulf %85, %86 : vector<8x1xf32>
    %88 = arith.mulf %79, %79 : vector<8x128xf32>
    %cst_34 = arith.constant dense<0.000000e+00> : vector<8xf32>
    %89 = vector.multi_reduction <add>, %88, %cst_34 [1] : vector<8x128xf32> to vector<8xf32>
    %90 = vector.shape_cast %89 : vector<8xf32> to vector<8x1xf32>
    %cst_35 = arith.constant 3.125000e-02 : f32
    %91 = vector.broadcast %cst_35 : f32 to vector<8x1xf32>
    %92 = arith.mulf %90, %91 : vector<8x1xf32>
    %93 = arith.mulf %87, %87 : vector<8x1xf32>
    %94 = arith.subf %92, %93 : vector<8x1xf32>
    %95 = vector.broadcast %87 : vector<8x1xf32> to vector<8x128xf32>
    %96 = arith.subf %79, %95 : vector<8x128xf32>
    %cst_36 = arith.constant 9.99999974E-6 : f32
    %97 = vector.broadcast %cst_36 : f32 to vector<8x1xf32>
    %98 = arith.addf %94, %97 : vector<8x1xf32>
    %99 = math.rsqrt %98 : vector<8x1xf32>
    %100 = vector.broadcast %99 : vector<8x1xf32> to vector<8x128xf32>
    %101 = arith.mulf %96, %100 : vector<8x128xf32>
    %102 = vector.broadcast %81 : vector<1x128xf32> to vector<8x128xf32>
    %103 = arith.mulf %101, %102 : vector<8x128xf32>
    %104 = vector.broadcast %83 : vector<1x128xf32> to vector<8x128xf32>
    %105 = arith.addf %103, %104 : vector<8x128xf32>
    %c0_37 = arith.constant 0 : index
    %c0_38 = arith.constant 0 : index
    %106 = vector.load %arg26[%c0_37, %c0_38] : memref<8x128xf32, #tpu.memory_space<vmem>>, vector<8x128xf32>
    %c0_39 = arith.constant 0 : index
    %c0_40 = arith.constant 0 : index
    %c0_41 = arith.constant 0 : index
    %107 = vector.load %arg12[%c0_39, %c0_40, %c0_41] : memref<1x128x32xbf16, #tpu.memory_space<vmem>>, vector<1x128x32xbf16>
    %108 = vector.shape_cast %107 : vector<1x128x32xbf16> to vector<128x32xbf16>
    %109 = arith.truncf %105 : vector<8x128xf32> to vector<8x128xbf16>
    %cst_42 = arith.constant dense<0.000000e+00> : vector<8x32xf32>
    %110 = tpu.matmul %109, %108, %cst_42 {dimension_numbers = #tpu.dot_dimension_numbers<[1], [0], [0], [1], [0, 0, 1, 1], [], []>} : vector<8x128xbf16>, vector<128x32xbf16>, vector<8x32xf32> -> vector<8x32xf32>
    %111 = vector.shape_cast %110 : vector<8x32xf32> to vector<8x4x8xf32>
    %c0_43 = arith.constant 0 : index
    %c0_44 = arith.constant 0 : index
    %c0_45 = arith.constant 0 : index
    %112 = vector.load %arg13[%c0_43, %c0_44, %c0_45] : memref<1x128x64xbf16, #tpu.memory_space<vmem>>, vector<1x128x64xbf16>
    %113 = vector.shape_cast %112 : vector<1x128x64xbf16> to vector<128x64xbf16>
    %114 = arith.truncf %106 : vector<8x128xf32> to vector<8x128xbf16>
    %cst_46 = arith.constant dense<0.000000e+00> : vector<8x64xf32>
    %115 = tpu.matmul %114, %113, %cst_46 {dimension_numbers = #tpu.dot_dimension_numbers<[1], [0], [0], [1], [0, 0, 1, 1], [], []>} : vector<8x128xbf16>, vector<128x64xbf16>, vector<8x64xf32> -> vector<8x64xf32>
    %116 = vector.extract_strided_slice %115 {offsets = [0, 0], sizes = [8, 32], strides = [1, 1]} : vector<8x64xf32> to vector<8x32xf32>
    %117 = vector.shape_cast %116 : vector<8x32xf32> to vector<8x4x8xf32>
    %118 = vector.extract_strided_slice %115 {offsets = [0, 32], sizes = [8, 32], strides = [1, 1]} : vector<8x64xf32> to vector<8x32xf32>
    %119 = vector.shape_cast %118 : vector<8x32xf32> to vector<8x4x8xf32>
    %120 = arith.truncf %111 : vector<8x4x8xf32> to vector<8x4x8xbf16>
    %121 = arith.truncf %117 : vector<8x4x8xf32> to vector<8x4x8xbf16>
    %cst_47 = arith.constant dense<0.000000e+00> : vector<4x8x8xf32>
    %122 = tpu.matmul %120, %121, %cst_47 {dimension_numbers = #tpu.dot_dimension_numbers<[2], [2], [0], [0], [0, 1, 0, 0, 1, 0], [1], [1]>} : vector<8x4x8xbf16>, vector<8x4x8xbf16>, vector<4x8x8xf32> -> vector<4x8x8xf32>
    %cst_48 = arith.constant 0.353553385 : f32
    %123 = vector.broadcast %cst_48 : f32 to vector<4x8x8xf32>
    %124 = arith.mulf %122, %123 : vector<4x8x8xf32>
    %cst_49 = arith.constant dense<0xFF800000> : vector<4x8xf32>
    %125 = vector.multi_reduction <maximumf>, %124, %cst_49 [2] : vector<4x8x8xf32> to vector<4x8xf32>
    %126 = vector.shape_cast %125 : vector<4x8xf32> to vector<4x8x1xf32>
    %127 = vector.broadcast %126 : vector<4x8x1xf32> to vector<4x8x8xf32>
    %128 = arith.subf %124, %127 : vector<4x8x8xf32>
    %129 = math.exp %128 : vector<4x8x8xf32>
    %cst_50 = arith.constant dense<0.000000e+00> : vector<4x8xf32>
    %130 = vector.multi_reduction <add>, %129, %cst_50 [2] : vector<4x8x8xf32> to vector<4x8xf32>
    %131 = vector.shape_cast %130 : vector<4x8xf32> to vector<4x8x1xf32>
    %132 = tpu.reciprocal %131 {approx = true} : vector<4x8x1xf32> -> vector<4x8x1xf32>
    %133 = vector.broadcast %132 : vector<4x8x1xf32> to vector<4x8x8xf32>
    %134 = arith.mulf %129, %133 : vector<4x8x8xf32>
    %135 = arith.truncf %134 : vector<4x8x8xf32> to vector<4x8x8xbf16>
    %136 = arith.truncf %119 : vector<8x4x8xf32> to vector<8x4x8xbf16>
    %cst_51 = arith.constant dense<0.000000e+00> : vector<4x8x8xf32>
    %137 = tpu.matmul %135, %136, %cst_51 {dimension_numbers = #tpu.dot_dimension_numbers<[2], [0], [1], [2], [0, 0, 0, 1, 1, 2], [0], [1]>} : vector<4x8x8xbf16>, vector<8x4x8xbf16>, vector<4x8x8xf32> -> vector<4x8x8xf32>
    %138 = vector.extract_strided_slice %137 {offsets = [0, 0, 0], sizes = [1, 8, 8], strides = [1, 1, 1]} : vector<4x8x8xf32> to vector<1x8x8xf32>
    %139 = vector.shape_cast %138 : vector<1x8x8xf32> to vector<8x8xf32>
    %140 = vector.extract_strided_slice %137 {offsets = [1, 0, 0], sizes = [1, 8, 8], strides = [1, 1, 1]} : vector<4x8x8xf32> to vector<1x8x8xf32>
    %141 = vector.shape_cast %140 : vector<1x8x8xf32> to vector<8x8xf32>
    %142 = vector.extract_strided_slice %137 {offsets = [2, 0, 0], sizes = [1, 8, 8], strides = [1, 1, 1]} : vector<4x8x8xf32> to vector<1x8x8xf32>
    %143 = vector.shape_cast %142 : vector<1x8x8xf32> to vector<8x8xf32>
    %144 = vector.extract_strided_slice %137 {offsets = [3, 0, 0], sizes = [1, 8, 8], strides = [1, 1, 1]} : vector<4x8x8xf32> to vector<1x8x8xf32>
    %145 = vector.shape_cast %144 : vector<1x8x8xf32> to vector<8x8xf32>
    %146 = tpu.concatenate %139, %141, %143, %145 in 1 : vector<8x8xf32>, vector<8x8xf32>, vector<8x8xf32>, vector<8x8xf32> -> vector<8x32xf32>
    %c0_52 = arith.constant 0 : index
    %c0_53 = arith.constant 0 : index
    %c0_54 = arith.constant 0 : index
    %147 = vector.load %arg14[%c0_52, %c0_53, %c0_54] : memref<1x32x128xbf16, #tpu.memory_space<vmem>>, vector<1x32x128xbf16>
    %148 = vector.shape_cast %147 : vector<1x32x128xbf16> to vector<32x128xbf16>
    %149 = arith.truncf %146 : vector<8x32xf32> to vector<8x32xbf16>
    %cst_55 = arith.constant dense<0.000000e+00> : vector<8x128xf32>
    %150 = tpu.matmul %149, %148, %cst_55 {dimension_numbers = #tpu.dot_dimension_numbers<[1], [0], [0], [1], [0, 0, 1, 1], [], []>} : vector<8x32xbf16>, vector<32x128xbf16>, vector<8x128xf32> -> vector<8x128xf32>
    %151 = arith.addf %79, %150 : vector<8x128xf32>
    %c0_56 = arith.constant 0 : index
    %c0_57 = arith.constant 0 : index
    %c0_58 = arith.constant 0 : index
    %152 = vector.load %arg15[%c0_56, %c0_57, %c0_58] : memref<1x1x128xf32, #tpu.memory_space<vmem>>, vector<1x1x128xf32>
    %153 = vector.shape_cast %152 : vector<1x1x128xf32> to vector<1x128xf32>
    %c0_59 = arith.constant 0 : index
    %c0_60 = arith.constant 0 : index
    %c0_61 = arith.constant 0 : index
    %154 = vector.load %arg16[%c0_59, %c0_60, %c0_61] : memref<1x1x128xf32, #tpu.memory_space<vmem>>, vector<1x1x128xf32>
    %155 = vector.shape_cast %154 : vector<1x1x128xf32> to vector<1x128xf32>
    %cst_62 = arith.constant dense<0.000000e+00> : vector<8xf32>
    %156 = vector.multi_reduction <add>, %151, %cst_62 [1] : vector<8x128xf32> to vector<8xf32>
    %157 = vector.shape_cast %156 : vector<8xf32> to vector<8x1xf32>
    %cst_63 = arith.constant 3.125000e-02 : f32
    %158 = vector.broadcast %cst_63 : f32 to vector<8x1xf32>
    %159 = arith.mulf %157, %158 : vector<8x1xf32>
    %160 = arith.mulf %151, %151 : vector<8x128xf32>
    %cst_64 = arith.constant dense<0.000000e+00> : vector<8xf32>
    %161 = vector.multi_reduction <add>, %160, %cst_64 [1] : vector<8x128xf32> to vector<8xf32>
    %162 = vector.shape_cast %161 : vector<8xf32> to vector<8x1xf32>
    %cst_65 = arith.constant 3.125000e-02 : f32
    %163 = vector.broadcast %cst_65 : f32 to vector<8x1xf32>
    %164 = arith.mulf %162, %163 : vector<8x1xf32>
    %165 = arith.mulf %159, %159 : vector<8x1xf32>
    %166 = arith.subf %164, %165 : vector<8x1xf32>
    %167 = vector.broadcast %159 : vector<8x1xf32> to vector<8x128xf32>
    %168 = arith.subf %151, %167 : vector<8x128xf32>
    %cst_66 = arith.constant 9.99999974E-6 : f32
    %169 = vector.broadcast %cst_66 : f32 to vector<8x1xf32>
    %170 = arith.addf %166, %169 : vector<8x1xf32>
    %171 = math.rsqrt %170 : vector<8x1xf32>
    %172 = vector.broadcast %171 : vector<8x1xf32> to vector<8x128xf32>
    %173 = arith.mulf %168, %172 : vector<8x128xf32>
    %174 = vector.broadcast %153 : vector<1x128xf32> to vector<8x128xf32>
    %175 = arith.mulf %173, %174 : vector<8x128xf32>
    %176 = vector.broadcast %155 : vector<1x128xf32> to vector<8x128xf32>
    %177 = arith.addf %175, %176 : vector<8x128xf32>
    %c0_67 = arith.constant 0 : index
    %c0_68 = arith.constant 0 : index
    %c0_69 = arith.constant 0 : index
    %178 = vector.load %arg17[%c0_67, %c0_68, %c0_69] : memref<1x128x128xbf16, #tpu.memory_space<vmem>>, vector<1x128x128xbf16>
    %179 = vector.shape_cast %178 : vector<1x128x128xbf16> to vector<128x128xbf16>
    %180 = arith.truncf %177 : vector<8x128xf32> to vector<8x128xbf16>
    %cst_70 = arith.constant dense<0.000000e+00> : vector<8x128xf32>
    %181 = tpu.matmul %180, %179, %cst_70 {dimension_numbers = #tpu.dot_dimension_numbers<[1], [0], [0], [1], [0, 0, 1, 1], [], []>} : vector<8x128xbf16>, vector<128x128xbf16>, vector<8x128xf32> -> vector<8x128xf32>
    %c0_71 = arith.constant 0 : index
    %c0_72 = arith.constant 0 : index
    %c0_73 = arith.constant 0 : index
    %182 = vector.load %arg18[%c0_71, %c0_72, %c0_73] : memref<1x1x128xf32, #tpu.memory_space<vmem>>, vector<1x1x128xf32>
    %183 = vector.shape_cast %182 : vector<1x1x128xf32> to vector<1x128xf32>
    %184 = vector.broadcast %183 : vector<1x128xf32> to vector<8x128xf32>
    %185 = arith.addf %181, %184 : vector<8x128xf32>
    %cst_74 = arith.constant 5.000000e-01 : f32
    %186 = vector.broadcast %cst_74 : f32 to vector<8x128xf32>
    %187 = arith.mulf %186, %185 : vector<8x128xf32>
    %cst_75 = arith.constant 0.707106769 : f32
    %188 = vector.broadcast %cst_75 : f32 to vector<8x128xf32>
    %189 = arith.mulf %185, %188 : vector<8x128xf32>
    %cst_76 = arith.constant 0.000000e+00 : f32
    %190 = vector.broadcast %cst_76 : f32 to vector<8x128xf32>
    %191 = arith.cmpf oge, %189, %190 : vector<8x128xf32>
    %cst_77 = arith.constant 1.000000e+00 : f32
    %cst_78 = arith.constant -1.000000e+00 : f32
    %192 = vector.broadcast %cst_77 : f32 to vector<8x128xf32>
    %193 = vector.broadcast %cst_78 : f32 to vector<8x128xf32>
    %194 = arith.select %191, %192, %193 : vector<8x128xi1>, vector<8x128xf32>
    %195 = math.absf %189 : vector<8x128xf32>
    %cst_79 = arith.constant 0.327591091 : f32
    %196 = vector.broadcast %cst_79 : f32 to vector<8x128xf32>
    %197 = arith.mulf %196, %195 : vector<8x128xf32>
    %cst_80 = arith.constant 1.000000e+00 : f32
    %198 = vector.broadcast %cst_80 : f32 to vector<8x128xf32>
    %199 = arith.addf %198, %197 : vector<8x128xf32>
    %200 = tpu.reciprocal %199 {approx = true} : vector<8x128xf32> -> vector<8x128xf32>
    %cst_81 = arith.constant 1.06140542 : f32
    %201 = vector.broadcast %cst_81 : f32 to vector<8x128xf32>
    %202 = arith.mulf %201, %200 : vector<8x128xf32>
    %cst_82 = arith.constant -1.45315206 : f32
    %203 = vector.broadcast %cst_82 : f32 to vector<8x128xf32>
    %204 = arith.addf %202, %203 : vector<8x128xf32>
    %205 = arith.mulf %204, %200 : vector<8x128xf32>
    %cst_83 = arith.constant 1.42141378 : f32
    %206 = vector.broadcast %cst_83 : f32 to vector<8x128xf32>
    %207 = arith.addf %205, %206 : vector<8x128xf32>
    %208 = arith.mulf %207, %200 : vector<8x128xf32>
    %cst_84 = arith.constant -0.284496725 : f32
    %209 = vector.broadcast %cst_84 : f32 to vector<8x128xf32>
    %210 = arith.addf %208, %209 : vector<8x128xf32>
    %211 = arith.mulf %210, %200 : vector<8x128xf32>
    %cst_85 = arith.constant 0.254829586 : f32
    %212 = vector.broadcast %cst_85 : f32 to vector<8x128xf32>
    %213 = arith.addf %211, %212 : vector<8x128xf32>
    %214 = arith.mulf %213, %200 : vector<8x128xf32>
    %cst_86 = arith.constant 0.000000e+00 : f32
    %215 = vector.broadcast %cst_86 : f32 to vector<8x128xf32>
    %216 = arith.subf %215, %195 : vector<8x128xf32>
    %217 = arith.mulf %216, %195 : vector<8x128xf32>
    %218 = math.exp %217 : vector<8x128xf32>
    %219 = arith.mulf %214, %218 : vector<8x128xf32>
    %cst_87 = arith.constant 1.000000e+00 : f32
    %220 = vector.broadcast %cst_87 : f32 to vector<8x128xf32>
    %221 = arith.subf %220, %219 : vector<8x128xf32>
    %222 = arith.mulf %194, %221 : vector<8x128xf32>
    %cst_88 = arith.constant 1.000000e+00 : f32
    %223 = vector.broadcast %cst_88 : f32 to vector<8x128xf32>
    %224 = arith.addf %223, %222 : vector<8x128xf32>
    %225 = arith.mulf %187, %224 : vector<8x128xf32>
    %c0_89 = arith.constant 0 : index
    %c0_90 = arith.constant 0 : index
    %c0_91 = arith.constant 0 : index
    %226 = vector.load %arg19[%c0_89, %c0_90, %c0_91] : memref<1x128x128xbf16, #tpu.memory_space<vmem>>, vector<1x128x128xbf16>
    %227 = vector.shape_cast %226 : vector<1x128x128xbf16> to vector<128x128xbf16>
    %228 = arith.truncf %225 : vector<8x128xf32> to vector<8x128xbf16>
    %cst_92 = arith.constant dense<0.000000e+00> : vector<8x128xf32>
    %229 = tpu.matmul %228, %227, %cst_92 {dimension_numbers = #tpu.dot_dimension_numbers<[1], [0], [0], [1], [0, 0, 1, 1], [], []>} : vector<8x128xbf16>, vector<128x128xbf16>, vector<8x128xf32> -> vector<8x128xf32>
    %230 = arith.addf %151, %229 : vector<8x128xf32>
    %c0_93 = arith.constant 0 : index
    %c0_94 = arith.constant 0 : index
    %c0_95 = arith.constant 0 : index
    %231 = vector.load %arg20[%c0_93, %c0_94, %c0_95] : memref<1x1x128xf32, #tpu.memory_space<vmem>>, vector<1x1x128xf32>
    %232 = vector.shape_cast %231 : vector<1x1x128xf32> to vector<1x128xf32>
    %233 = vector.broadcast %232 : vector<1x128xf32> to vector<8x128xf32>
    %234 = arith.addf %230, %233 : vector<8x128xf32>
    %c0_96 = arith.constant 0 : index
    %c0_97 = arith.constant 0 : index
    %235 = vector.load %arg25[%c0_96, %c0_97] : memref<8x128xf32, #tpu.memory_space<vmem>>, vector<8x128xf32>
    tpu.vector_store %arg25[%c0_96, %c0_97], %234 {strides = array<i32>} : memref<8x128xf32, #tpu.memory_space<vmem>>, vector<8x128xf32>,
    %c1_i32 = arith.constant 1 : i32
    %236 = arith.cmpi eq, %arg1, %c1_i32 : i32
    %237 = arith.extui %236 : i1 to i32
    %c0_i32_98 = arith.constant 0 : i32
    %238 = arith.cmpi ne, %237, %c0_i32_98 : i32
    scf.if %238 {
      %c0_99 = arith.constant 0 : index
      %c0_100 = arith.constant 0 : index
      %239 = vector.load %arg21[%c0_99, %c0_100] : memref<1x128xf32, #tpu.memory_space<vmem>>, vector<1x128xf32>
      %c0_101 = arith.constant 0 : index
      %c0_102 = arith.constant 0 : index
      %240 = vector.load %arg22[%c0_101, %c0_102] : memref<1x128xf32, #tpu.memory_space<vmem>>, vector<1x128xf32>
      %cst_103 = arith.constant dense<0.000000e+00> : vector<8xf32>
      %241 = vector.multi_reduction <add>, %234, %cst_103 [1] : vector<8x128xf32> to vector<8xf32>
      %242 = vector.shape_cast %241 : vector<8xf32> to vector<8x1xf32>
      %cst_104 = arith.constant 3.125000e-02 : f32
      %243 = vector.broadcast %cst_104 : f32 to vector<8x1xf32>
      %244 = arith.mulf %242, %243 : vector<8x1xf32>
      %245 = arith.mulf %234, %234 : vector<8x128xf32>
      %cst_105 = arith.constant dense<0.000000e+00> : vector<8xf32>
      %246 = vector.multi_reduction <add>, %245, %cst_105 [1] : vector<8x128xf32> to vector<8xf32>
      %247 = vector.shape_cast %246 : vector<8xf32> to vector<8x1xf32>
      %cst_106 = arith.constant 3.125000e-02 : f32
      %248 = vector.broadcast %cst_106 : f32 to vector<8x1xf32>
      %249 = arith.mulf %247, %248 : vector<8x1xf32>
      %250 = arith.mulf %244, %244 : vector<8x1xf32>
      %251 = arith.subf %249, %250 : vector<8x1xf32>
      %252 = vector.broadcast %244 : vector<8x1xf32> to vector<8x128xf32>
      %253 = arith.subf %234, %252 : vector<8x128xf32>
      %cst_107 = arith.constant 9.99999974E-6 : f32
      %254 = vector.broadcast %cst_107 : f32 to vector<8x1xf32>
      %255 = arith.addf %251, %254 : vector<8x1xf32>
      %256 = math.rsqrt %255 : vector<8x1xf32>
      %257 = vector.broadcast %256 : vector<8x1xf32> to vector<8x128xf32>
      %258 = arith.mulf %253, %257 : vector<8x128xf32>
      %259 = vector.broadcast %239 : vector<1x128xf32> to vector<8x128xf32>
      %260 = arith.mulf %258, %259 : vector<8x128xf32>
      %261 = vector.broadcast %240 : vector<1x128xf32> to vector<8x128xf32>
      %262 = arith.addf %260, %261 : vector<8x128xf32>
      %c0_108 = arith.constant 0 : index
      %c0_109 = arith.constant 0 : index
      %263 = vector.load %arg23[%c0_108, %c0_109] : memref<128x128xbf16, #tpu.memory_space<vmem>>, vector<128x128xbf16>
      %264 = arith.truncf %262 : vector<8x128xf32> to vector<8x128xbf16>
      %cst_110 = arith.constant dense<0.000000e+00> : vector<8x128xf32>
      %265 = tpu.matmul %264, %263, %cst_110 {dimension_numbers = #tpu.dot_dimension_numbers<[1], [0], [0], [1], [0, 0, 1, 1], [], []>} : vector<8x128xbf16>, vector<128x128xbf16>, vector<8x128xf32> -> vector<8x128xf32>
      %c0_111 = arith.constant 0 : index
      %c0_112 = arith.constant 0 : index
      %c0_113 = arith.constant 0 : index
      %266 = vector.load %arg24[%c0_111, %c0_112, %c0_113] : memref<1x8x128xf32, #tpu.memory_space<vmem>>, vector<1x8x128xf32>
      %267 = vector.shape_cast %266 : vector<1x8x128xf32> to vector<8x128xf32>
      %268 = vector.shape_cast %265 : vector<8x128xf32> to vector<1x8x128xf32>
      tpu.vector_store %arg24[%c0_111, %c0_112, %c0_113], %268 {strides = array<i32>} : memref<1x8x128xf32, #tpu.memory_space<vmem>>, vector<1x8x128xf32>,
    } else {
    }
    return
  }
  func.func @transform_0(%arg0: i32, %arg1: i32) -> (i32, i32, i32) {
    %c0_i32 = arith.constant 0 : i32
    %c0_i32_0 = arith.constant 0 : i32
    %c0_i32_1 = arith.constant 0 : i32
    return %arg0, %c0_i32, %c0_i32_0 : i32, i32, i32
  }
  func.func @transform_1(%arg0: i32, %arg1: i32) -> (i32, i32, i32) {
    %c0_i32 = arith.constant 0 : i32
    %c0_i32_0 = arith.constant 0 : i32
    %c0_i32_1 = arith.constant 0 : i32
    return %arg0, %c0_i32, %c0_i32_0 : i32, i32, i32
  }
  func.func @transform_2(%arg0: i32, %arg1: i32) -> (i32, i32) {
    %c0_i32 = arith.constant 0 : i32
    %c0_i32_0 = arith.constant 0 : i32
    %c0_i32_1 = arith.constant 0 : i32
    return %c0_i32, %c0_i32_0 : i32, i32
  }
  func.func @transform_3(%arg0: i32, %arg1: i32) -> (i32, i32) {
    %c0_i32 = arith.constant 0 : i32
    %c0_i32_0 = arith.constant 0 : i32
    %c0_i32_1 = arith.constant 0 : i32
    return %c0_i32, %c0_i32_0 : i32, i32
  }
  func.func @transform_4(%arg0: i32, %arg1: i32) -> (i32, i32, i32) {
    %c0_i32 = arith.constant 0 : i32
    %c0_i32_0 = arith.constant 0 : i32
    %c0_i32_1 = arith.constant 0 : i32
    return %arg1, %c0_i32, %c0_i32_0 : i32, i32, i32
  }
  func.func @transform_5(%arg0: i32, %arg1: i32) -> (i32, i32, i32) {
    %c0_i32 = arith.constant 0 : i32
    %c0_i32_0 = arith.constant 0 : i32
    %c0_i32_1 = arith.constant 0 : i32
    return %arg1, %c0_i32, %c0_i32_0 : i32, i32, i32
  }
  func.func @transform_6(%arg0: i32, %arg1: i32) -> (i32, i32, i32) {
    %c0_i32 = arith.constant 0 : i32
    %c0_i32_0 = arith.constant 0 : i32
    %c0_i32_1 = arith.constant 0 : i32
    return %arg1, %c0_i32, %c0_i32_0 : i32, i32, i32
  }
  func.func @transform_7(%arg0: i32, %arg1: i32) -> (i32, i32, i32) {
    %c0_i32 = arith.constant 0 : i32
    %c0_i32_0 = arith.constant 0 : i32
    %c0_i32_1 = arith.constant 0 : i32
    return %arg1, %c0_i32, %c0_i32_0 : i32, i32, i32
  }
  func.func @transform_8(%arg0: i32, %arg1: i32) -> (i32, i32, i32) {
    %c0_i32 = arith.constant 0 : i32
    %c0_i32_0 = arith.constant 0 : i32
    %c0_i32_1 = arith.constant 0 : i32
    return %arg1, %c0_i32, %c0_i32_0 : i32, i32, i32
  }
  func.func @transform_9(%arg0: i32, %arg1: i32) -> (i32, i32, i32) {
    %c0_i32 = arith.constant 0 : i32
    %c0_i32_0 = arith.constant 0 : i32
    %c0_i32_1 = arith.constant 0 : i32
    return %arg1, %c0_i32, %c0_i32_0 : i32, i32, i32
  }
  func.func @transform_10(%arg0: i32, %arg1: i32) -> (i32, i32, i32) {
    %c0_i32 = arith.constant 0 : i32
    %c0_i32_0 = arith.constant 0 : i32
    %c0_i32_1 = arith.constant 0 : i32
    return %arg1, %c0_i32, %c0_i32_0 : i32, i32, i32
  }
  func.func @transform_11(%arg0: i32, %arg1: i32) -> (i32, i32, i32) {
    %c0_i32 = arith.constant 0 : i32
    %c0_i32_0 = arith.constant 0 : i32
    %c0_i32_1 = arith.constant 0 : i32
    return %arg1, %c0_i32, %c0_i32_0 : i32, i32, i32
  }
  func.func @transform_12(%arg0: i32, %arg1: i32) -> (i32, i32, i32) {
    %c0_i32 = arith.constant 0 : i32
    %c0_i32_0 = arith.constant 0 : i32
    %c0_i32_1 = arith.constant 0 : i32
    return %arg1, %c0_i32, %c0_i32_0 : i32, i32, i32
  }
  func.func @transform_13(%arg0: i32, %arg1: i32) -> (i32, i32, i32) {
    %c0_i32 = arith.constant 0 : i32
    %c0_i32_0 = arith.constant 0 : i32
    %c0_i32_1 = arith.constant 0 : i32
    return %arg1, %c0_i32, %c0_i32_0 : i32, i32, i32
  }
  func.func @transform_14(%arg0: i32, %arg1: i32) -> (i32, i32, i32) {
    %c0_i32 = arith.constant 0 : i32
    %c0_i32_0 = arith.constant 0 : i32
    %c0_i32_1 = arith.constant 0 : i32
    return %arg1, %c0_i32, %c0_i32_0 : i32, i32, i32
  }
  func.func @transform_15(%arg0: i32, %arg1: i32) -> (i32, i32, i32) {
    %c0_i32 = arith.constant 0 : i32
    %c0_i32_0 = arith.constant 0 : i32
    %c0_i32_1 = arith.constant 0 : i32
    return %arg1, %c0_i32, %c0_i32_0 : i32, i32, i32
  }
  func.func @transform_16(%arg0: i32, %arg1: i32) -> (i32, i32, i32) {
    %c0_i32 = arith.constant 0 : i32
    %c0_i32_0 = arith.constant 0 : i32
    %c0_i32_1 = arith.constant 0 : i32
    return %arg1, %c0_i32, %c0_i32_0 : i32, i32, i32
  }
  func.func @transform_17(%arg0: i32, %arg1: i32) -> (i32, i32, i32) {
    %c0_i32 = arith.constant 0 : i32
    %c0_i32_0 = arith.constant 0 : i32
    %c0_i32_1 = arith.constant 0 : i32
    return %arg1, %c0_i32, %c0_i32_0 : i32, i32, i32
  }
  func.func @transform_18(%arg0: i32, %arg1: i32) -> (i32, i32, i32) {
    %c0_i32 = arith.constant 0 : i32
    %c0_i32_0 = arith.constant 0 : i32
    %c0_i32_1 = arith.constant 0 : i32
    return %arg1, %c0_i32, %c0_i32_0 : i32, i32, i32
  }
  func.func @transform_19(%arg0: i32, %arg1: i32) -> (i32, i32) {
    %c0_i32 = arith.constant 0 : i32
    %c0_i32_0 = arith.constant 0 : i32
    %c0_i32_1 = arith.constant 0 : i32
    return %c0_i32, %c0_i32_0 : i32, i32
  }
  func.func @transform_20(%arg0: i32, %arg1: i32) -> (i32, i32) {
    %c0_i32 = arith.constant 0 : i32
    %c0_i32_0 = arith.constant 0 : i32
    %c0_i32_1 = arith.constant 0 : i32
    return %c0_i32, %c0_i32_0 : i32, i32
  }
  func.func @transform_21(%arg0: i32, %arg1: i32) -> (i32, i32) {
    %c0_i32 = arith.constant 0 : i32
    %c0_i32_0 = arith.constant 0 : i32
    %c0_i32_1 = arith.constant 0 : i32
    return %c0_i32, %c0_i32_0 : i32, i32
  }
  func.func @transform_22(%arg0: i32, %arg1: i32) -> (i32, i32, i32) {
    %c0_i32 = arith.constant 0 : i32
    %c0_i32_0 = arith.constant 0 : i32
    %c0_i32_1 = arith.constant 0 : i32
    return %arg0, %c0_i32, %c0_i32_0 : i32, i32, i32
  }
}

</mosaic_0001>

<bundles_post_ra>
// kernel: waveai_forward.1
= control target key start
LH: loop header
LB: loop body
LE: loop exit
PB: predicated region body
PF: predicated region fallthrough
CT: control target
= control target key end

     0   :  { %s4607_s28 = smov 0   ;;  %s4609_s29 = smov 0   ;;  %s5328_s0 = inlined_call_operand.vmem [shape: f32[2,8,128], index: 0, kind: input, shape index: {}]   ;;  %s5329_s1 = inlined_call_operand.vmem [shape: f32[2,8,128], index: 1, kind: input, shape index: {}]   ;;  %s5330_s2 = inlined_call_operand.vmem [shape: bf16[128,128], index: 2, kind: input, shape index: {}]   ;;  %s5331_s3 = inlined_call_operand.vmem [shape: f32[1,128], index: 3, kind: input, shape index: {}]   ;;  %s5332_s4 = inlined_call_operand.vmem [shape: f32[2,1,128], index: 4, kind: input, shape index: {}]   ;;  %s5333_s5 = inlined_call_operand.vmem [shape: f32[2,1,128], index: 5, kind: input, shape index: {}]   ;;  %s5334_s6 = inlined_call_operand.vmem [shape: bf16[2,128,96], index: 6, kind: input, shape index: {}]   ;;  %s5335_s7 = inlined_call_operand.vmem [shape: bf16[2,32,128], index: 7, kind: input, shape index: {}]   ;;  %s5336_s8 = inlined_call_operand.vmem [shape: f32[2,1,128], index: 8, kind: input, shape index: {}]   ;;  %s5337_s9 = inlined_call_operand.vmem [shape: f32[2,1,128], index: 9, kind: input, shape index: {}]   ;;  %s5338_s10 = inlined_call_operand.vmem [shape: bf16[2,128,32], index: 10, kind: input, shape index: {}]   ;;  %s5339_s11 = inlined_call_operand.vmem [shape: bf16[2,128,64], index: 11, kind: input, shape index: {}]   ;;  %s5340_s12 = inlined_call_operand.vmem [shape: bf16[2,32,128], index: 12, kind: input, shape index: {}]   ;;  %s5341_s13 = inlined_call_operand.vmem [shape: f32[2,1,128], index: 13, kind: input, shape index: {}]   ;;  %s5342_s14 = inlined_call_operand.vmem [shape: f32[2,1,128], index: 14, kind: input, shape index: {}]   ;;  %s5343_s15 = inlined_call_operand.vmem [shape: bf16[2,128,128], index: 15, kind: input, shape index: {}]   ;;  %s5344_s16 = inlined_call_operand.vmem [shape: f32[2,1,128], index: 16, kind: input, shape index: {}]   ;;  %s5345_s17 = inlined_call_operand.vmem [shape: bf16[2,128,128], index: 17, kind: input, shape index: {}]   ;;  %s5346_s18 = inlined_call_operand.vmem [shape: f32[2,1,128], index: 18, kind: input, shape index: {}]   ;;  %s5347_s19 = inlined_call_operand.vmem [shape: f32[1,128], index: 19, kind: input, shape index: {}]   ;;  %s5348_s20 = inlined_call_operand.vmem [shape: f32[1,128], index: 20, kind: input, shape index: {}]   ;;  %s5349_s21 = inlined_call_operand.vmem [shape: bf16[128,128], index: 21, kind: input, shape index: {}]   ;;  %s5350_s22 = inlined_call_operand.vmem [shape: f32[2,8,128], index: 22, kind: output, shape index: {}]  }
   0x1   :  { %5357 = sst [smem:[#allocation10_spill]] %s5328_s0  ;;  %s4611_s30 = smov 0  }
   0x2   :  { %5358 = sst [smem:[#allocation11_spill]] %s5329_s1 }
   0x3   :  { %5359 = sst [smem:[#allocation12_spill]] %s5330_s2 }
   0x4   :  { %5360 = sst [smem:[#allocation13_spill]] %s5331_s3  ;;  %s4605_s3 = smov 0  }
   0x5   :  { %5361 = sst [smem:[#allocation14_spill]] %s5332_s4  ;;  %s4613_s4 = smov 0  }
   0x6   :  { %5362 = sst [smem:[#allocation15_spill]] %s5333_s5 }
   0x7   :  { %5363 = sst [smem:[#allocation16_spill]] %s5334_s6 }
   0x8   :  { %5364 = sst [smem:[#allocation17_spill]] %s5335_s7 }
   0x9   :  { %5365 = sst [smem:[#allocation18_spill]] %s5338_s10 }
   0xa   :  { %5366 = sst [smem:[#allocation19_spill]] %s5339_s11 }
   0xb   :  { %5367 = sst [smem:[#allocation20_spill]] %s5340_s12 }
   0xc   :  { %5368 = sst [smem:[#allocation21_spill]] %s5341_s13 }
   0xd   :  { %5369 = sst [smem:[#allocation22_spill]] %s5342_s14 }
   0xe   :  { %5370 = sst [smem:[#allocation23_spill]] %s5345_s17 }
   0xf   :  { %5371 = sst [smem:[#allocation24_spill]] %s5346_s18 }
  0x10   :  { %5372 = sst [smem:[#allocation25_spill]] %s5347_s19 }
  0x11   :  { %5373 = sst [smem:[#allocation26_spill]] %s5348_s20 }
  0x12   :  { %5374 = sst [smem:[#allocation27_spill]] %s5349_s21 }
  0x13   :  { %5375 = sst [smem:[#allocation28_spill]] %s5350_s22 }
  0x14 LB: > { %5376 = sst [smem:[#allocation4_spill]] %s4461_s3  ;;  %s41_s0 = sadd.s32 1, %s4469_s29  ;;  %s4477_s4 = sphi %s4613_s4, %s32_s4   ;;  %s4473_s30 = sphi %s4611_s30, %s5421_s30   ;;  %s4469_s29 = sphi %s4609_s29, %s5420_s29   ;;  %s4465_s28 = sphi %s4607_s28, %s5419_s28   ;;  %s4461_s3 = sphi %s4605_s3, %s5418_s3  }
  0x15   : > { %5377 = sst [smem:[#allocation5_spill]] %s4469_s29  ;;  %s44_s23 = sadd.s32 1, %s4473_s30 }
  0x16   : > { %5378 = sst [smem:[#allocation6_spill]] %s4473_s30  ;;  %p42_p0 = scmp.ge.s32.totalorder %s41_s0, 2 }
  0x17   : > { %5379 = sst [smem:[#allocation7_spill]] %s4477_s4  ;;  %p3901_p1 = scmp.ge.s32.totalorder %s4477_s4, 1 }
  0x18   : > { %p766_p2 = scmp.lt.s32.totalorder %s4477_s4, 5  ;;  %s5423_s0 = smov (%p42_p0, %s41_s0), 0 }
  0x19   : > { %5380 = sst [smem:[#allocation8_spill]] %s5423_s0  ;;  %s5425_s23 = smov (!%p42_p0, %s44_s23), %s4473_s30 }
  0x1a   : > { %p767_p3 = pnand %p3901_p1, %p766_p2  ;;  %p46_p4 = scmp.ge.s32.totalorder %s5425_s23, 2 }
  0x1b   : > { %p889_p5 = scmp.lt.s32.totalorder (!%p767_p3), %s4465_s28, 1  ;;  %p897_p6 = scmp.lt.s32.totalorder (!%p767_p3), %s4461_s3, 1 }
  0x1c   : > { %s5427_s23 = smov (%p46_p4, %s5425_s23), 0  ;;  %770 = sbr.rel (%p767_p3) target bundleno = 4359 (0x1107), region = 108 }
  0x1d   : > { %5381 = sst [smem:[#allocation9_spill]] %s5427_s23 }
  0x1e   : > { %s5382_s25 = sld [smem:[#allocation10_spill]] (!%p767_p3) }
  0x1f   : > { %s5387_s7 = sld [smem:[#allocation17_spill]] (!%p767_p3) }
  0x20   : > { %s5388_s10 = sld [smem:[#allocation18_spill]] (!%p767_p3) }
  0x21   : > { %s5429_s28 = smov (!%p889_p5, %s4465_s28), 1  ;;  %s5389_s11 = sld [smem:[#allocation19_spill]] }
  0x22   : > { %s4639_s1 = scalar_select %p897_p6, %s4461_s3, 1 }
  0x23   : > { %s4641_s5 = sshll.u32 %s5429_s28, 3  ;;  %s5390_s12 = sld [smem:[#allocation20_spill]] }
  0x24   : > { %s892_s26 = scalar_lea.vmem %s5382_s25, %s4641_s5  ;;  %s4181_s22 = sshll.u32 %s4639_s1, 6 }
  0x25   : > { %s4182_s18 = sshll.u32 %s4639_s1, 4  ;;  %s5386_s25 = sld [smem:[#allocation16_spill]] }
  0x26   : > { %s4669_s23 = scalar_lea.vmem %s5387_s7, %s4182_s18  ;;  %s4682_s0 = scalar_lea.vmem %s5388_s10, %s4181_s22 }
  0x27   : > { %s4705_s10 = scalar_lea.vmem %s5343_s15, %s4181_s22  ;;  %s5393_s27 = sld [smem:[#allocation23_spill]] }
  0x28   : > { %s5394_s19 = sld [smem:[#allocation24_spill]] }
  0x29   : > { %s4692_s7 = scalar_lea.vmem %s5390_s12, %s4182_s18  ;;  %s5395_s20 = sld [smem:[#allocation28_spill]] }
  0x2a   : > { %s5396_s4 = sld [smem:[#allocation4_spill]] }
  0x2b   : > { %s4664_s17 = scalar_lea.vmem %s5386_s25, %s4181_s22  ;;  %s4687_s25 = scalar_lea.vmem %s5389_s11, %s4181_s22 }
  0x2c   : > { %s947_s11 = scalar_lea.vmem %s5344_s16, %s4639_s1 }
  0x2d   : > { %s4714_s12 = scalar_lea.vmem %s5393_s27, %s4181_s22 }
  0x2e   : > { %s955_s13 = scalar_lea.vmem %s5394_s19, %s4639_s1 }
  0x2f   : > { %s959_s14 = scalar_lea.vmem %s5395_s20, %s4641_s5 }
  0x30   : > { %p3919_p7 = scmp.ne.s32.totalorder %s5396_s4, 0 }
  0x31   : > { %s5397_s6 = sld [smem:[#allocation12_spill]] (!%p3919_p7) }
  0x32   : > { %964 = sbr.rel (%p3919_p7) target bundleno = 221 (0xdd), region = 112  ;;  %s5398_s19 = sld [smem:[#allocation11_spill]] (!%p3919_p7) }
  0x37   : > { %v965_v0 = vld [vmem:[%s892_s26] sm:$0xff]  ;;  %v4195_v1 = vld [vmem:[%s5397_s6 + $0x38] sm:$0xff]  ;;  %v4194_v2 = vld [vmem:[%s5397_s6 + $0x30] sm:$0xff]  ;;  %s5400_s26 = sld [smem:[#allocation13_spill]] }
  0x38   : > { %966 = vst [vmem:[#allocation2] sm:$0xff] %v965_v0  ;;  %1037 = vmatpush.bf16.msra.mxu0 %v4195_v1  ;;  %v4193_v3 = vld [vmem:[%s5397_s6 + $0x28] sm:$0xff]  ;;  %v4192_v4 = vld [vmem:[%s5397_s6 + $0x20] sm:$0xff]  ;;  %v4191_v5 = vld [vmem:[%s5397_s6 + $0x18] sm:$0xff]  ;;  %s5399_s18 = scalar_lea.vmem %s5398_s19, %s4641_s5 }
  0x39   : > { %v4190_v6 = vld [vmem:[%s5397_s6 + $0x10] sm:$0xff]  ;;  %v4189_v7 = vld [vmem:[%s5397_s6 + $0x8] sm:$0xff]  ;;  %v4188_v8 = vld [vmem:[%s5397_s6] sm:$0xff] }
  0x3a   : > { %v967_v9 = vld [vmem:[%s5399_s18] sm:$0xff] }
  0x3b   : > { %v984_v10 = vpack.c.bf16 %v967_v9, %v967_v9 }
  0x3c   : > { %1038 = vmatpush.bf16.msra.mxu0 %v4194_v2 }
  0x3d   : > { %v4300_v11 = vld [vmem:[%s5400_s26] ss:$0 sm:$0xff] }
  0x40   : > { %1039 = vmatpush.bf16.msra.mxu0 %v4193_v3 }
  0x44   : > { %1040 = vmatpush.bf16.msra.mxu0 %v4192_v4 }
  0x48   : > { %1041 = vmatpush.bf16.msra.mxu0 %v4191_v5 }
  0x4c   : > { %1042 = vmatpush.bf16.msra.mxu0 %v4190_v6 }
  0x50   : > { %1043 = vmatpush.bf16.msra.mxu0 %v4189_v7 }
  0x54   : > { %1044 = vmatpush.bf16.msra.mxu0 %v4188_v8 }
  0x57   : > { %1045 = vmatmul.bf16.vlgmr.msra.gmra.mxu0 %v984_v10 }
  0xd4   : > { %v1046_v12 = vpop.f32.mrf.mxu0 }
  0xd5   : > { %v1047_v13 = vadd.f32 %v4300_v11, %v1046_v12 }
  0xd7   : > { %1050 = vst [vmem:[#allocation3] sm:$0xff] %v1047_v13 }
  0xdc   : > { %v1048_v14 = vpop.f32.mrf.mxu0 }
  0xdd PF: > { %v1051_v15 = vld [vmem:[#allocation2] sm:$0xff]  ;;  %v4203_v17 = vld [vmem:[%s4664_s17 + $0x38] sm:$0xff]  ;;  %v4202_v18 = vld [vmem:[%s4664_s17 + $0x30] sm:$0xff]  ;;  %s5401_s30 = sld [smem:[#allocation14_spill]]  ;;  %s4479_s22 = smov 112   ;;  %vm1173_vm3 = vcmask 1047556  }
  0xde   : > { %1054 = vadd.xlane.f32.xlu0 %v1051_v15  ;;  %v1057_v16 = vmul.f32 %v1051_v15, %v1051_v15  ;;  %1149 = vmatpush.bf16.msra.mxu0 %v4203_v17  ;;  %v4201_v19 = vld [vmem:[%s4664_s17 + $0x28] sm:$0xff]  ;;  %v4200_v20 = vld [vmem:[%s4664_s17 + $0x20] sm:$0xff]  ;;  %v4199_v21 = vld [vmem:[%s4664_s17 + $0x18] sm:$0xff]  ;;  %s5403_s28 = sld [smem:[#allocation15_spill]]  ;;  %s4480_s2 = smov 120   ;;  %vm1834_vm4 = vcmask 1043456  }
  0xdf   : > { %v4198_v22 = vld [vmem:[%s4664_s17 + $0x10] sm:$0xff]  ;;  %v4197_v23 = vld [vmem:[%s4664_s17 + $0x8] sm:$0xff]  ;;  %v4196_v25 = vld [vmem:[%s4664_s17] sm:$0xff]  ;;  %s4481_s19 = smov 104   ;;  %s4482_s18 = smov 96   ;;  %vm1830_vm5 = vcmask 64512  }
  0xe0   : > { %v4483_v56 = vmov 1983009808   ;;  %v4484_v0 = vmov 1934713408   ;;  %s4485_s20 = smov 64   ;;  %s4486_s27 = smov 8  }
  0xe1   : > { %v1178_v57 = vunpack.c.l.s4 %v4483_v56  ;;  %v1202_v1 = vunpack.c.l.s4 %v4484_v0  ;;  %s4487_s26 = smov 16   ;;  %s4488_s17 = smov 24   ;;  %vm2120_vm7 = vcmask 130048   ;;  %vm2122_vm8 = vcmask 195584  }
  0xe2   : > { %1150 = vmatpush.bf16.msra.mxu0 %v4202_v18  ;;  %vm2141_vm9 = vcmask 261120   ;;  %s5407_s21 = sld [smem:[#allocation21_spill]] }
  0xe3   : > { %s5402_s3 = scalar_lea.vmem %s5401_s30, %s4639_s1  ;;  %v4795_v63 = vunpack.c.0.s8 %v1178_v57  ;;  %v4804_v13 = vunpack.c.0.s8 %v1202_v1 }
  0xe4   : > { %v4384_v39 = vld [vmem:[%s5402_s3] ss:$0 sm:$0xff]  ;;  %s5404_s24 = scalar_lea.vmem %s5403_s28, %s4639_s1  ;;  %s5406_s3 = scalar_lea.vmem %s5337_s9, %s4639_s1 }
  0xe5   : > { %v4385_v42 = vld [vmem:[%s5404_s24] ss:$0 sm:$0xff] }
  0xe6   : > { %1058 = vadd.xlane.f32.xlu0 %v1057_v16  ;;  %1151 = vmatpush.bf16.msra.mxu0 %v4201_v19 }
  0xe8   : > { %s5408_s4 = scalar_lea.vmem %s5407_s21, %s4639_s1 }
  0xea   : > { %1152 = vmatpush.bf16.msra.mxu0 %v4200_v20 }
  0xee   : > { %1153 = vmatpush.bf16.msra.mxu0 %v4199_v21 }
  0xf2   : > { %1154 = vmatpush.bf16.msra.mxu0 %v4198_v22 }
  0xf6   : > { %1155 = vmatpush.bf16.msra.mxu0 %v4197_v23 }
  0xfa   : > { %1156 = vmatpush.bf16.msra.mxu0 %v4196_v25 }
 0x151   : > { %v1055_v24 = vpop.xlane.xlu0 %1054 }
 0x152   : > { %v1056_v26 = vmul.f32 0.03125, %v1055_v24 }
 0x154   : > { %v1061_v28 = vmul.f32 %v1056_v26, %v1056_v26  ;;  %v1063_v38 = vsub.f32 %v1051_v15, %v1056_v26 }
 0x159   : > { %v1059_v27 = vpop.xlane.xlu0 %1058 }
 0x15a   : > { %v1060_v29 = vmul.f32 0.03125, %v1059_v27 }
 0x15c   : > { %v1062_v30 = vsub.f32 %v1060_v29, %v1061_v28 }
 0x15e   : > { %v1064_v31 = vadd.f32 1e-05, %v1062_v30 }
 0x160   : > { %4392 = vrsqrt.f32 %v1064_v31  ;;  %vm1071_vm1 = vweird.f32 %v1064_v31 }
 0x166   : > { %v4393_v32 = vpop.eup %4392 }
 0x167   : > { %v1066_v33 = vmul.f32 %v4393_v32, %v1064_v31  ;;  %vm1072_vm0 = vweird.f32 %v4393_v32 }
 0x168   : > { %vm1073_vm2 = vmor %vm1071_vm1, %vm1072_vm0 }
 0x169   : > { %v1067_v34 = vmul.f32 %v4393_v32, %v1066_v33 }
 0x16b   : > { %v1068_v35 = vmul.f32 0.5, %v1067_v34 }
 0x16d   : > { %v1069_v36 = vsub.f32 1.5, %v1068_v35 }
 0x16f   : > { %v1070_v37 = vmul.f32 %v4393_v32, %v1069_v36 }
 0x171   : > { %v1074_v40 = vsel %vm1073_vm2, %v4393_v32, %v1070_v37 }
 0x172   : > { %v1075_v41 = vmul.f32 %v1074_v40, %v1063_v38 }
 0x174   : > { %v1079_v43 = vmul.f32 %v4384_v39, %v1075_v41 }
 0x176   : > { %v1083_v44 = vadd.f32 %v4385_v42, %v1079_v43 }
 0x178   : > { %v1100_v45 = vpack.c.bf16 %v1083_v44, %v1083_v44 }
 0x17a   : > { %1157 = vmatmul.bf16.vlgmr.msra.gmra.mxu0 %v1100_v45 }
 0x1f7   : > { %v4775_v46 = vpop.f32.mrf.mxu0 }
 0x1f8   : > { %1166 = vrot.lane.b32.xlu2 %v4775_v46, %s4479_s22  ;;  %1163 = vrot.lane.b32.xlu1 %v4775_v46, %s4480_s2 }
 0x1ff   : > { %v1160_v47 = vpop.f32.mrf.mxu0 }
 0x200   : > { %1169 = vrot.lane.b32.xlu1 %v4775_v46, %s4481_s19 }
 0x252   : > { %v4788_v50 = vpop.permute.xlu2 %1166 }
 0x26a   : > { %v4783_v48 = vpop.permute.xlu1 %1163 }
 0x26b   : > { %v4301_v49 = vpack.i.bf16 %v4775_v46, %v4783_v48 }
 0x26d   : > { %4302 = vrot.lane.b32.xlu2 %v4301_v49, %s4482_s18 }
 0x272   : > { %v4790_v51 = vpop.permute.xlu1 %1169 }
 0x273   : > { %v4306_v52 = vpack.i.bf16 %v4788_v50, %v4790_v51 }
 0x275   : > { %4307 = vrot.lane.b32.xlu0 %v4306_v52, %s4482_s18 }
 0x2c7   : > { %v4303_v53 = vpop.permute.xlu2 %4302 }
 0x2c8   : > { %v4305_v54 = vunpack.i.h.bf16 %v4303_v53  ;;  %v4304_v55 = vunpack.i.l.bf16 %v4303_v53 }
 0x2ca   : > { %v1243_v59 = vrot.slane %v4305_v54, 4  ;;  %v1255_v60 = vrot.slane %v4304_v55, 4 }
 0x2e7   : > { %v4308_v58 = vpop.permute.xlu0 %4307 }
 0x2e8   : > { %v4310_v61 = vunpack.i.h.bf16 %v4308_v58  ;;  %v4309_v62 = vunpack.i.l.bf16 %v4308_v58 }
 0x2ea   : > { %v1241_v2 = vrot.slane %v4310_v61, 4  ;;  %v1244_v3 = vsel %vm1173_vm3, %v4310_v61, %v1243_v59  ;;  %v1253_v4 = vrot.slane %v4309_v62, 4  ;;  %v1256_v5 = vsel %vm1173_vm3, %v4309_v62, %v1255_v60 }
 0x2eb   : > { %v1252_v6 = vperm.slane %v1244_v3, %v4795_v63  ;;  %v1264_v7 = vperm.slane %v1256_v5, %v4795_v63 }
 0x2ec   : > { %v1242_v8 = vsel %vm1173_vm3, %v1241_v2, %v4305_v54  ;;  %v1254_v9 = vsel %vm1173_vm3, %v1253_v4, %v4304_v55 }
 0x2ed   : > { %v1279_v10 = vrot.slane %v1252_v6, 4  ;;  %v1260_v11 = vperm.slane %v1254_v9, %v4795_v63  ;;  %v1277_v12 = vrot.slane %v1264_v7, 4  ;;  %v1248_v14 = vperm.slane %v1242_v8, %v4795_v63 }
 0x2ef   : > { %v1265_v15 = vrot.slane %v1260_v11, 4  ;;  %v1280_v16 = vsel %vm1173_vm3, %v1264_v7, %v1279_v10  ;;  %v1278_v17 = vsel %vm1173_vm3, %v1277_v12, %v1252_v6  ;;  %v1267_v30 = vrot.slane %v1248_v14, 4 }
 0x2f0   : > { %v1288_v18 = vperm.slane %v1280_v16, %v4804_v13  ;;  %v1284_v19 = vperm.slane %v1278_v17, %v4804_v13 }
 0x2f1   : > { %v1266_v20 = vsel %vm1173_vm3, %v1265_v15, %v1248_v14  ;;  %v1268_v35 = vsel %vm1173_vm3, %v1260_v11, %v1267_v30 }
 0x2f2   : > { %v1295_v21 = vrot.slane %v1288_v18, 4  ;;  %v1293_v22 = vrot.slane %v1284_v19, 4  ;;  %v1272_v23 = vperm.slane %v1266_v20, %v4804_v13  ;;  %v1379_v26 = vpack.c.bf16 %v1288_v18, %v1288_v18 }
 0x2f3   : > { %v1377_v31 = vpack.c.bf16 %v1284_v19, %v1284_v19  ;;  %v1276_v36 = vperm.slane %v1268_v35, %v4804_v13 }
 0x2f4   : > { %v1296_v24 = vsel %vm1173_vm3, 0.0, %v1295_v21  ;;  %v1294_v25 = vsel %vm1173_vm3, 0.0, %v1293_v22  ;;  %v1289_v29 = vrot.slane %v1272_v23, 4  ;;  %v1373_v33 = vpack.c.bf16 %v1272_v23, %v1272_v23 }
 0x2f5   : > { %v1380_v27 = vpack.c.bf16 %v1296_v24, %v1296_v24  ;;  %v1378_v28 = vpack.c.bf16 %v1294_v25, %v1294_v25  ;;  %v1291_v37 = vrot.slane %v1276_v36, 4  ;;  %v1375_v39 = vpack.c.bf16 %v1276_v36, %v1276_v36 }
 0x2f6   : > { %v1290_v32 = vsel %vm1173_vm3, 0.0, %v1289_v29 }
 0x2f7   : > { %4314 = vxpose.binary.xlu0.c.b16.start.end [1/2] (short) (narrow) %v1380_v27, %v1379_v26, 16  ;;  %v1374_v34 = vpack.c.bf16 %v1290_v32, %v1290_v32  ;;  %v1292_v38 = vsel %vm1173_vm3, 0.0, %v1291_v37 }
 0x2f8   : > { %4311 = vxpose.binary.xlu1.c.b16.start.end [1/2] (short) (narrow) %v1378_v28, %v1377_v31, 16  ;;  %v1376_v40 = vpack.c.bf16 %v1292_v38, %v1292_v38 }
 0x2f9   : > { %4317 = vxpose.binary.xlu2.c.b16.start.end [1/2] (short) (narrow) %v1374_v34, %v1373_v33, 16 }
 0x309   : > { %4320 = vxpose.binary.xlu2.c.b16.start.end [1/2] (short) (narrow) %v1376_v40, %v1375_v39, 16  ;;  %v1175_v39 = vrot.slane %v4775_v46, 4  ;;  %v1172_v40 = vrot.slane %v4788_v50, 4 }
 0x39a   : > { %v4318_v41 = vpop.trf.xlu2 }
 0x3a2   : > { %v4319_v42 = vpop.trf.xlu2 }
 0x3a3   : > { %v4315_v43 = vpop.trf.xlu0 }
 0x3a4   : > { %v4312_v44 = vpop.trf.xlu1  ;;  %v1568_v49 = vrot.slane %v4315_v43, 4  ;;  %v1185_v43 = vrot.slane %v4790_v51, 4 }
 0x3a5   : > { %v1562_v45 = vrot.slane %v4312_v44, 4 }
 0x3a7   : > { %v1563_v47 = vsel %vm1173_vm3, %v1562_v45, %v4318_v41  ;;  %v1176_v41 = vsel %vm1173_vm3, %v4788_v50, %v1175_v39 }
 0x3a8   : > { %v1567_v52 = vperm.slane %v1563_v47, %v4795_v63  ;;  %v1184_v45 = vperm.slane %v1176_v41, %v4795_v63  ;;  %v1174_v47 = vsel %vm1173_vm3, %v1172_v40, %v4775_v46 }
 0x3aa   : > { %v4321_v53 = vpop.trf.xlu2  ;;  %v1576_v56 = vrot.slane %v1567_v52, 4 }
 0x3ab   : > { %v1569_v54 = vsel %vm1173_vm3, %v1568_v49, %v4321_v53  ;;  %v4316_v59 = vpop.trf.xlu0  ;;  %v1180_v53 = vperm.slane %v1174_v47, %v4795_v63 }
 0x3ac   : > { %v4313_v55 = vpop.trf.xlu1  ;;  %v1573_v57 = vperm.slane %v1569_v54, %v4795_v63  ;;  %v1596_v0 = vrot.slane %v4316_v59, 4  ;;  %v1211_v54 = vrot.slane %v1184_v45, 4 }
 0x3ad   : > { %v1590_v58 = vrot.slane %v4313_v55, 4 }
 0x3ae   : > { %v1574_v60 = vrot.slane %v1573_v57, 4  ;;  %v1577_v61 = vsel %vm1173_vm3, %v1573_v57, %v1576_v56 }
 0x3af   : > { %v1591_v62 = vsel %vm1173_vm3, %v1590_v58, %v4319_v42  ;;  %v1585_v3 = vperm.slane %v1577_v61, %v4804_v13  ;;  %v1187_v42 = vrot.slane %v4783_v48, 4  ;;  %v1199_v58 = vrot.slane %v1180_v53, 4 }
 0x3b0   : > { %v1575_v1 = vsel %vm1173_vm3, %v1574_v60, %v1567_v52  ;;  %v1595_v2 = vperm.slane %v1591_v62, %v4795_v63  ;;  %v1186_v52 = vsel %vm1173_vm3, %v1185_v43, %v4783_v48 }
 0x3b1   : > { %v1581_v4 = vperm.slane %v1575_v1, %v4804_v13  ;;  %v1588_v9 = vrot.slane %v1585_v3, 4  ;;  %v1638_v16 = vshrl.u32 %v1585_v3, 16  ;;  %v1188_v44 = vsel %vm1173_vm3, %v4790_v51, %v1187_v42 }
 0x3b2   : > { %v4322_v5 = vpop.trf.xlu2  ;;  %v1604_v7 = vrot.slane %v1595_v2, 4  ;;  %v1196_v49 = vperm.slane %v1188_v44, %v4795_v63  ;;  %v1192_v55 = vperm.slane %v1186_v52, %v4795_v63 }
 0x3b3   : > { %v1597_v6 = vsel %vm1173_vm3, %v1596_v0, %v4322_v5  ;;  %v1586_v12 = vrot.slane %v1581_v4, 4  ;;  %v1589_v19 = vsel %vm1173_vm3, 0, %v1588_v9  ;;  %v1622_v36 = vshrl.u32 %v1581_v4, 16 }
 0x3b4   : > { %v1601_v8 = vperm.slane %v1597_v6, %v4795_v63  ;;  %v1646_v26 = vshrl.u32 %v1589_v19, 16  ;;  %v1209_v56 = vrot.slane %v1196_v49, 4  ;;  %v1212_v57 = vsel %vm1173_vm3, %v1196_v49, %v1211_v54 }
 0x3b5   : > { %v1587_v21 = vsel %vm1173_vm3, 0, %v1586_v12  ;;  %v1220_v59 = vperm.slane %v1212_v57, %v4804_v13  ;;  %v1197_v60 = vrot.slane %v1192_v55, 4  ;;  %v1200_v61 = vsel %vm1173_vm3, %v1192_v55, %v1199_v58 }
 0x3b6   : > { %v1602_v10 = vrot.slane %v1601_v8, 4  ;;  %v1605_v11 = vsel %vm1173_vm3, %v1601_v8, %v1604_v7  ;;  %v1630_v31 = vshrl.u32 %v1587_v21, 16  ;;  %v1210_v62 = vsel %vm1173_vm3, %v1209_v56, %v1184_v45 }
 0x3b7   : > { %v1613_v14 = vperm.slane %v1605_v11, %v4804_v13  ;;  %v1208_v0 = vperm.slane %v1200_v61, %v4804_v13  ;;  %v1216_v1 = vperm.slane %v1210_v62, %v4804_v13  ;;  %v1371_v12 = vpack.c.bf16 %v1220_v59, %v1220_v59 }
 0x3b8   : > { %v1603_v15 = vsel %vm1173_vm3, %v1602_v10, %v1595_v2  ;;  %v1227_v2 = vrot.slane %v1220_v59, 4 }
 0x3b9   : > { %v1609_v17 = vperm.slane %v1603_v15, %v4804_v13  ;;  %v1639_v18 = vshrl.u32 %v1613_v14, 16  ;;  %v1616_v20 = vrot.slane %v1613_v14, 4  ;;  %v1636_v22 = vpack.i.b16 %v1613_v14, %v1585_v3 }
 0x3ba   : > { %v1198_v3 = vsel %vm1173_vm3, %v1197_v60, %v1180_v53  ;;  %v1223_v5 = vrot.slane %v1208_v0, 4  ;;  %v1225_v6 = vrot.slane %v1216_v1, 4  ;;  %v1228_v7 = vsel %vm1173_vm3, 0.0, %v1227_v2 }
 0x3bb   : > { %v1640_v23 = vpack.i.b16 %v1639_v18, %v1638_v16  ;;  %v1617_v24 = vsel %vm1173_vm3, 0, %v1616_v20  ;;  %v1614_v25 = vrot.slane %v1609_v17, 4  ;;  %v1623_v35 = vshrl.u32 %v1609_v17, 16 }
 0x3bc   : > { %v1647_v27 = vshrl.u32 %v1617_v24, 16  ;;  %v1644_v29 = vpack.i.b16 %v1617_v24, %v1589_v19  ;;  %v1620_v37 = vpack.i.b16 %v1609_v17, %v1581_v4  ;;  %v1204_v4 = vperm.slane %v1198_v3, %v4804_v13 }
 0x3bd   : > { %4326 = vxpose.binary.xlu2.c.b16.start.end [1/2] (short) (narrow) %v1640_v23, %v1636_v22, 16  ;;  %v1615_v28 = vsel %vm1173_vm3, 0, %v1614_v25  ;;  %v1624_v38 = vpack.i.b16 %v1623_v35, %v1622_v36  ;;  %v1372_v9 = vpack.c.bf16 %v1228_v7, %v1228_v7  ;;  %v1226_v11 = vsel %vm1173_vm3, 0.0, %v1225_v6 }
 0x3be   : > { %v1648_v30 = vpack.i.b16 %v1647_v27, %v1646_v26  ;;  %v1631_v32 = vshrl.u32 %v1615_v28, 16  ;;  %v1628_v33 = vpack.i.b16 %v1615_v28, %v1587_v21  ;;  %v1221_v10 = vrot.slane %v1204_v4, 4 }
 0x3bf   : > { %v1224_v14 = vsel %vm1173_vm3, 0.0, %v1223_v5  ;;  %v1370_v16 = vpack.c.bf16 %v1226_v11, %v1226_v11  ;;  %v1408_v17 = vrot.slane %v1372_v9, 4  ;;  %v1367_v20 = vpack.c.bf16 %v1208_v0, %v1208_v0 }
 0x3c0   : > { %4329 = vxpose.binary.xlu1.c.b16.start.end [1/2] (short) (narrow) %v1648_v30, %v1644_v29, 16  ;;  %v1632_v34 = vpack.i.b16 %v1631_v32, %v1630_v31  ;;  %v1368_v19 = vpack.c.bf16 %v1224_v14, %v1224_v14  ;;  %v1369_v21 = vpack.c.bf16 %v1216_v1, %v1216_v1  ;;  %v1388_v22 = vrot.slane %v1371_v12, 4 }
 0x3c1   : > { %v1222_v25 = vsel %vm1173_vm3, 0.0, %v1221_v10  ;;  %v1402_v26 = vrot.slane %v1370_v16, 4  ;;  %v1365_v31 = vpack.c.bf16 %v1204_v4, %v1204_v4 }
 0x3c2   : > { %4323 = vxpose.binary.xlu0.c.b16.start.end [1/2] (short) (narrow) %v1632_v34, %v1628_v33, 16  ;;  %v1366_v28 = vpack.c.bf16 %v1222_v25, %v1222_v25  ;;  %v1409_v29 = vsel %vm1173_vm3, %v1408_v17, %v1368_v19  ;;  %v1381_v30 = vrot.slane %v1369_v21, 4  ;;  %v1389_v32 = vsel %vm1173_vm3, %v1388_v22, %v1367_v20 }
 0x3c3   : > { %v1413_v35 = vperm.slane %v1409_v29, %v4795_v63 }
 0x3c4   : > { %v1383_v41 = vsel %vm1173_vm3, %v1381_v30, %v1365_v31 }
 0x3c5   : > { %v1414_v49 = vrot.slane %v1413_v35, 4  ;;  %v1387_v53 = vperm.slane %v1383_v41, %v4795_v63  ;;  %v1912_v35 = vlaneseq }
 0x3d0   : > { %4332 = vxpose.binary.xlu1.c.b16.start.end [1/2] (short) (narrow) %v1624_v38, %v1620_v37, 16  ;;  %v1393_v37 = vperm.slane %v1389_v32, %v4795_v63  ;;  %v1403_v38 = vsel %vm1173_vm3, %v1402_v26, %v1366_v28 }
 0x3d1   : > { %v1407_v47 = vperm.slane %v1403_v38, %v4795_v63 }
 0x3d2   : > { %v1394_v54 = vrot.slane %v1393_v37, 4  ;;  %v1915_v37 = vand.u32 127, %v1912_v35 }
 0x3d3   : > { %v1415_v58 = vsel %vm1173_vm3, %v1414_v49, %v1407_v47 }
 0x3d4   : > { %v1395_v60 = vsel %vm1173_vm3, %v1394_v54, %v1387_v53  ;;  %v1419_v0 = vperm.slane %v1415_v58, %v4804_v13 }
 0x3d5   : > { %v1399_v3 = vperm.slane %v1395_v60, %v4804_v13 }
 0x3d6   : > { %v1420_v7 = vrot.slane %v1419_v0, 4 }
 0x3d7   : > { %v1400_v9 = vrot.slane %v1399_v3, 4  ;;  %v1425_v25 = vshrl.u32 %v1399_v3, 16 }
 0x3d8   : > { %v1421_v19 = vsel %vm1173_vm3, 0, %v1420_v7 }
 0x3d9   : > { %v1401_v26 = vsel %vm1173_vm3, 0, %v1400_v9  ;;  %v1432_v29 = vshrl.u32 %v1421_v19, 16 }
 0x3da   : > { %v1431_v32 = vshrl.u32 %v1401_v26, 16 }
 0x45e   : > { %v4327_v24 = vpop.trf.xlu2 }
 0x45f   : > { %v1778_v33 = vrot.slane %v4327_v24, 4  ;;  %v1424_v24 = vpack.i.b16 %v1419_v0, %v1399_v3 }
 0x466   : > { %v4328_v45 = vpop.trf.xlu2 }
 0x467   : > { %v1798_v56 = vrot.slane %v4328_v45, 4 }
 0x46c   : > { %v4330_v8 = vpop.trf.xlu1 }
 0x46d   : > { %v1784_v18 = vrot.slane %v4330_v8, 4 }
 0x46e   : > { %v4324_v15 = vpop.trf.xlu0 }
 0x46f   : > { %v1785_v27 = vsel %vm1173_vm3, %v1784_v18, %v4324_v15  ;;  %v1426_v15 = vshrl.u32 %v1419_v0, 16 }
 0x470   : > { %v1789_v34 = vperm.slane %v1785_v27, %v4795_v63 }
 0x471   : > { %v1427_v30 = vpack.i.b16 %v1426_v15, %v1425_v25 }
 0x472   : > { %v1790_v43 = vrot.slane %v1789_v34, 4  ;;  %v1430_v34 = vpack.i.b16 %v1421_v19, %v1401_v26 }
 0x474   : > { %v4331_v23 = vpop.trf.xlu1 }
 0x475   : > { %v1804_v36 = vrot.slane %v4331_v23, 4 }
 0x476   : > { %v4325_v39 = vpop.trf.xlu0 }
 0x477   : > { %v1805_v52 = vsel %vm1173_vm3, %v1804_v36, %v4325_v39  ;;  %v1913_v36 = vshrl.u32 %v1912_v35, 7 }
 0x478   : > { %v1809_v57 = vperm.slane %v1805_v52, %v4795_v63 }
 0x479   : > { %vm1916_vm6 = vcmp.ge.s32.totalorder %v1913_v36, %v1915_v37 }
 0x47a   : > { %v1810_v1 = vrot.slane %v1809_v57, 4 }
 0x47c   : > { %v4333_v40 = vpop.trf.xlu1 }
 0x47d   : > { %v1779_v42 = vsel %vm1173_vm3, %v1778_v33, %v4333_v40  ;;  %v1433_v33 = vpack.i.b16 %v1432_v29, %v1431_v32 }
 0x47e   : > { %v1783_v44 = vperm.slane %v1779_v42, %v4795_v63 }
 0x480   : > { %v1791_v55 = vsel %vm1173_vm3, %v1790_v43, %v1783_v44 }
 0x481   : > { %v1795_v59 = vperm.slane %v1791_v55, %v4804_v13 }
 0x483   : > { %v1796_v4 = vrot.slane %v1795_v59, 4  ;;  %v1821_v8 = vshrl.u32 %v1795_v59, 16 }
 0x484   : > { %v4334_v61 = vpop.trf.xlu1 }
 0x485   : > { %v1799_v62 = vsel %vm1173_vm3, %v1798_v56, %v4334_v61  ;;  %v1797_v12 = vsel %vm1173_vm3, 0, %v1796_v4  ;;  %v4335_v61 = vpack.i.bf16 %v4783_v48, %v4775_v46 }
 0x486   : > { %v1803_v2 = vperm.slane %v1799_v62, %v4795_v63  ;;  %v1827_v21 = vshrl.u32 %v1797_v12, 16  ;;  %v4340_v62 = vpack.i.bf16 %v4790_v51, %v4788_v50 }
 0x488   : > { %v1811_v5 = vsel %vm1173_vm3, %v1810_v1, %v1803_v2 }
 0x489   : > { %v1815_v6 = vperm.slane %v1811_v5, %v4804_v13 }
 0x48b   : > { %v1820_v10 = vpack.i.b16 %v1815_v6, %v1795_v59  ;;  %v1822_v11 = vshrl.u32 %v1815_v6, 16  ;;  %v1816_v14 = vrot.slane %v1815_v6, 4 }
 0x48d   : > { %v1836_v16 = vsel %vm1834_vm4, %v1820_v10, 0  ;;  %v1823_v17 = vpack.i.b16 %v1822_v11, %v1821_v8  ;;  %v1817_v18 = vsel %vm1173_vm3, 0, %v1816_v14 }
 0x48e   : > { %1845 = vmatpush.bf16.msra.mxu3 %v1836_v16  ;;  %v1826_v20 = vpack.i.b16 %v1817_v18, %v1797_v12  ;;  %v1828_v22 = vshrl.u32 %v1817_v18, 16 }
 0x48f   : > { %v1855_v23 = vsel %vm1834_vm4, %v1823_v17, 0 }
 0x490   : > { %1864 = vmatpush.bf16.msrb.mxu0 %v1855_v23  ;;  %v1874_v27 = vsel %vm1834_vm4, %v1826_v20, 0  ;;  %v1829_v28 = vpack.i.b16 %v1828_v22, %v1827_v21 }
 0x491   : > { %3984 = vmatmul.msk.bf16.vlgmr.msra.gmra.mxu3 %vm1830_vm5, %v1424_v24 }
 0x492   : > { %1883 = vmatpush.bf16.msrb.mxu3 %v1874_v27  ;;  %v1893_v31 = vsel %vm1834_vm4, %v1829_v28, 0 }
 0x493   : > { %3985 = vmatmul.msk.bf16.vlgmr.msrb.gmra.mxu0 %vm1830_vm5, %v1427_v30  ;;  %1902 = vmatpush.bf16.msra.mxu1 %v1893_v31 }
 0x496   : > { %3987 = vmatmul.msk.bf16.vlgmr.msra.gmra.mxu1 %vm1830_vm5, %v1433_v33 }
 0x4a1   : > { %3986 = vmatmul.msk.bf16.vlgmr.msrb.gmra.mxu3 %vm1830_vm5, %v1430_v34 }
 0x510   : > { %v1866_v38 = vpop.f32.mrf.mxu0 }
 0x511   : > { %v1909_v39 = vmul.f32 0.35355338, %v1866_v38 }
 0x513   : > { %v1904_v40 = vpop.f32.mrf.mxu1  ;;  %v1920_v41 = vsel %vm1916_vm6, %v1909_v39, -1e+30 }
 0x514   : > { %v1911_v42 = vmul.f32 0.35355338, %v1904_v40  ;;  %v1847_v43 = vpop.f32.mrf.mxu3  ;;  %v1926_v44 = vsel %vm1830_vm5, %v1920_v41, -inf }
 0x515   : > { %v1908_v45 = vmul.f32 0.35355338, %v1847_v43  ;;  %1927 = vmax.xlane.f32.xlu2 %v1926_v44 }
 0x516   : > { %v1922_v47 = vsel %vm1916_vm6, %v1911_v42, -1e+30 }
 0x517   : > { %v1932_v49 = vsel %vm1830_vm5, %v1922_v47, -inf  ;;  %v1919_v52 = vsel %vm1916_vm6, %v1908_v45, -1e+30 }
 0x518   : > { %1933 = vmax.xlane.f32.xlu1 %v1932_v49  ;;  %v1868_v53 = vpop.f32.mrf.mxu0  ;;  %v1923_v54 = vsel %vm1830_vm5, %v1919_v52, -inf }
 0x519   : > { %1924 = vmax.xlane.f32.xlu0 %v1923_v54 }
 0x51b   : > { %v1906_v55 = vpop.f32.mrf.mxu1 }
 0x51c   : > { %v1849_v56 = vpop.f32.mrf.mxu3 }
 0x524   : > { %v1885_v57 = vpop.f32.mrf.mxu3 }
 0x525   : > { %v1910_v58 = vmul.f32 0.35355338, %v1885_v57 }
 0x527   : > { %v1921_v59 = vsel %vm1916_vm6, %v1910_v58, -1e+30 }
 0x528   : > { %v1929_v60 = vsel %vm1830_vm5, %v1921_v59, -inf }
 0x529   : > { %1930 = vmax.xlane.f32.xlu1 %v1929_v60 }
 0x52c   : > { %v1887_v0 = vpop.f32.mrf.mxu3 }
 0x52d   : > { %4336 = vrot.lane.b32.xlu0 %v4335_v61, %s4485_s20  ;;  %4341 = vrot.lane.b32.xlu2 %v4340_v62, %s4485_s20 }
 0x588   : > { %v1928_v2 = vpop.xlane.xlu2 %1927 }
 0x589   : > { %v1936_v7 = vsub.f32 %v1920_v41, %v1928_v2 }
 0x58b   : > { %v1934_v1 = vpop.xlane.xlu1 %1933  ;;  %v1941_v9 = vmul.f32 1.442695, %v1936_v7 }
 0x58c   : > { %v1938_v3 = vsub.f32 %v1922_v47, %v1934_v1  ;;  %v1925_v4 = vpop.xlane.xlu0 %1924 }
 0x58d   : > { %v1935_v5 = vsub.f32 %v1919_v52, %v1925_v4 }
 0x58e   : > { %v1945_v6 = vmul.f32 1.442695, %v1938_v3 }
 0x58f   : > { %v1939_v8 = vmul.f32 1.442695, %v1935_v5 }
 0x590   : > { %4394 = vpow2.f32 %v1945_v6  ;;  %v4342_v50 = vpop.permute.xlu2 %4341 }
 0x591   : > { %4396 = vpow2.f32 %v1939_v8  ;;  %v4344_v11 = vunpack.i.h.bf16 %v4342_v50  ;;  %v4343_v12 = vunpack.i.l.bf16 %v4342_v50 }
 0x592   : > { %4398 = vpow2.f32 %v1941_v9 }
 0x593   : > { %v1321_v17 = vrot.slane %v4344_v11, 4  ;;  %v1309_v20 = vrot.slane %v4343_v12, 4 }
 0x596   : > { %v4915_v10 = vpop.eup %4394 }
 0x597   : > { %v4917_v46 = vpop.eup %4396  ;;  %v1956_v48 = vsel %vm1830_vm5, %v4915_v10, 0.0 }
 0x598   : > { %1957 = vadd.xlane.f32.xlu0 %v1956_v48  ;;  %v1947_v51 = vsel %vm1830_vm5, %v4917_v46, 0.0  ;;  %v4923_v15 = vpop.eup %4398 }
 0x599   : > { %1948 = vadd.xlane.f32.xlu1 %v1947_v51  ;;  %v1950_v23 = vsel %vm1830_vm5, %v4923_v15, 0.0 }
 0x59c   : > { %v1931_v14 = vpop.xlane.xlu1 %1930 }
 0x59d   : > { %v1937_v16 = vsub.f32 %v1921_v59, %v1931_v14 }
 0x59f   : > { %v1943_v18 = vmul.f32 1.442695, %v1937_v16  ;;  %v4337_v19 = vpop.permute.xlu0 %4336 }
 0x5a0   : > { %v4339_v21 = vunpack.i.h.bf16 %v4337_v19  ;;  %v4338_v22 = vunpack.i.l.bf16 %v4337_v19 }
 0x5a1   : > { %4400 = vpow2.f32 %v1943_v18  ;;  %1951 = vadd.xlane.f32.xlu1 %v1950_v23 }
 0x5a2   : > { %v1323_v24 = vrot.slane %v4339_v21, 4  ;;  %v1310_v25 = vsel %vm1173_vm3, %v1309_v20, %v4338_v22  ;;  %v1311_v26 = vrot.slane %v4338_v22, 4  ;;  %v1322_v27 = vsel %vm1173_vm3, %v1321_v17, %v4339_v21 }
 0x5a3   : > { %v1316_v28 = vperm.slane %v1310_v25, %v4795_v63  ;;  %v1328_v29 = vperm.slane %v1322_v27, %v4795_v63 }
 0x5a4   : > { %v1312_v30 = vsel %vm1173_vm3, %v4343_v12, %v1311_v26  ;;  %v1324_v31 = vsel %vm1173_vm3, %v4344_v11, %v1323_v24 }
 0x5a5   : > { %v1320_v32 = vperm.slane %v1312_v30, %v4795_v63  ;;  %v1332_v33 = vperm.slane %v1324_v31, %v4795_v63  ;;  %v1333_v34 = vrot.slane %v1328_v29, 4  ;;  %v1335_v35 = vrot.slane %v1316_v28, 4 }
 0x5a7   : > { %v4935_v36 = vpop.eup %4400  ;;  %v1334_v37 = vsel %vm1173_vm3, %v1333_v34, %v1316_v28  ;;  %v1336_v38 = vsel %vm1173_vm3, %v1328_v29, %v1335_v35  ;;  %v1345_v39 = vrot.slane %v1332_v33, 4  ;;  %v1347_v40 = vrot.slane %v1320_v32, 4 }
 0x5a8   : > { %v1340_v41 = vperm.slane %v1334_v37, %v4804_v13  ;;  %v1344_v42 = vperm.slane %v1336_v38, %v4804_v13  ;;  %v1953_v43 = vsel %vm1830_vm5, %v4935_v36, 0.0 }
 0x5a9   : > { %v1346_v44 = vsel %vm1173_vm3, %v1345_v39, %v1320_v32  ;;  %v1348_v45 = vsel %vm1173_vm3, %v1332_v33, %v1347_v40  ;;  %1954 = vadd.xlane.f32.xlu1 %v1953_v43 }
 0x5aa   : > { %v1352_v47 = vperm.slane %v1346_v44, %v4804_v13  ;;  %v1356_v49 = vperm.slane %v1348_v45, %v4804_v13  ;;  %v1357_v52 = vrot.slane %v1340_v41, 4  ;;  %v1359_v53 = vrot.slane %v1344_v42, 4 }
 0x5ab   : > { %v1971_v60 = vpack.c.bf16 %v1340_v41, %v1340_v41  ;;  %v1973_v61 = vpack.c.bf16 %v1344_v42, %v1344_v42 }
 0x5ac   : > { %v1361_v54 = vrot.slane %v1352_v47, 4  ;;  %v1363_v55 = vrot.slane %v1356_v49, 4  ;;  %v1358_v56 = vsel %vm1173_vm3, 0.0, %v1357_v52  ;;  %v1360_v57 = vsel %vm1173_vm3, 0.0, %v1359_v53 }
 0x5ad   : > { %v1975_v58 = vpack.c.bf16 %v1352_v47, %v1352_v47  ;;  %v1977_v59 = vpack.c.bf16 %v1356_v49, %v1356_v49  ;;  %v1972_v5 = vpack.c.bf16 %v1358_v56, %v1358_v56  ;;  %v1974_v6 = vpack.c.bf16 %v1360_v57, %v1360_v57 }
 0x5ae   : > { %v1362_v62 = vsel %vm1173_vm3, 0.0, %v1361_v54  ;;  %v1364_v0 = vsel %vm1173_vm3, 0.0, %v1363_v55 }
 0x5af   : > { %v1985_v1 = vrot.slane %v1977_v59, 4  ;;  %v1976_v2 = vpack.c.bf16 %v1362_v62, %v1362_v62  ;;  %v1978_v3 = vpack.c.bf16 %v1364_v0, %v1364_v0  ;;  %v1979_v4 = vrot.slane %v1975_v58, 4 }
 0x5b1   : > { %v1980_v7 = vsel %vm1173_vm3, %v1979_v4, %v1971_v60  ;;  %v1986_v8 = vsel %vm1173_vm3, %v1985_v1, %v1973_v61  ;;  %v1999_v9 = vrot.slane %v1976_v2, 4  ;;  %v2005_v48 = vrot.slane %v1978_v3, 4  ;;  %v4205_v1 = vld [vmem:[%s4669_s23 + $0x8] sm:$0xff]  ;;  %v4204_v2 = vld [vmem:[%s4669_s23] sm:$0xff]  ;;  %v4221_v3 = vld [vmem:[%s4687_s25 + $0x38] sm:$0xff] }
 0x5b2   : > { %v1990_v50 = vperm.slane %v1986_v8, %v4795_v63  ;;  %v1984_v12 = vperm.slane %v1980_v7, %v4795_v63 }
 0x5b3   : > { %v2000_v51 = vsel %vm1173_vm3, %v1999_v9, %v1972_v5  ;;  %v2006_v11 = vsel %vm1173_vm3, %v2005_v48, %v1974_v6 }
 0x5b4   : > { %v1991_v14 = vrot.slane %v1990_v50, 4  ;;  %v2010_v16 = vperm.slane %v2006_v11, %v4795_v63  ;;  %v2004_v18 = vperm.slane %v2000_v51, %v4795_v63  ;;  %v4220_v50 = vld [vmem:[%s4687_s25 + $0x30] sm:$0xff]  ;;  %v4219_v51 = vld [vmem:[%s4687_s25 + $0x28] sm:$0xff]  ;;  %v4218_v11 = vld [vmem:[%s4687_s25 + $0x20] sm:$0xff] }
 0x5b6   : > { %v1992_v17 = vsel %vm1173_vm3, %v1991_v14, %v1984_v12  ;;  %v2011_v19 = vrot.slane %v2010_v16, 4  ;;  %v4217_v12 = vld [vmem:[%s4687_s25 + $0x18] sm:$0xff]  ;;  %v4216_v14 = vld [vmem:[%s4687_s25 + $0x10] sm:$0xff]  ;;  %v4215_v16 = vld [vmem:[%s4687_s25 + $0x8] sm:$0xff] }
 0x5b7   : > { %v1996_v20 = vperm.slane %v1992_v17, %v4804_v13  ;;  %v4214_v17 = vld [vmem:[%s4687_s25] sm:$0xff]  ;;  %s5405_s25 = scalar_lea.vmem %s5336_s8, %s4639_s1 }
 0x5b8   : > { %v2012_v21 = vsel %vm1173_vm3, %v2011_v19, %v2004_v18  ;;  %v2191_v18 = vld [vmem:[#allocation3] sm:$0xff] }
 0x5b9   : > { %v2016_v22 = vperm.slane %v2012_v21, %v4804_v13  ;;  %v1997_v23 = vrot.slane %v1996_v20, 4  ;;  %v2022_v24 = vshrl.u32 %v1996_v20, 16  ;;  %v2352_v19 = vpack.c.bf16 %v2191_v18, %v2191_v18  ;;  %v4434_v21 = vld [vmem:[#allocation2] sm:$0xff] }
 0x5bb   : > { %v2021_v25 = vpack.i.b16 %v2016_v22, %v1996_v20  ;;  %v2023_v26 = vshrl.u32 %v2016_v22, 16  ;;  %v1998_v27 = vsel %vm1173_vm3, 0, %v1997_v23  ;;  %v2017_v28 = vrot.slane %v2016_v22, 4 }
 0x5bc   : > { %v2028_v33 = vshrl.u32 %v1998_v27, 16 }
 0x5bd   : > { %v2035_v29 = vsel %vm1834_vm4, %v2021_v25, 0  ;;  %v2024_v30 = vpack.i.b16 %v2023_v26, %v2022_v24  ;;  %v2018_v31 = vsel %vm1173_vm3, 0, %v2017_v28  ;;  %v4213_v25 = vld [vmem:[%s4682_s0 + $0x38] sm:$0xff]  ;;  %v4212_v26 = vld [vmem:[%s4682_s0 + $0x30] sm:$0xff]  ;;  %v4210_v28 = vld [vmem:[%s4682_s0 + $0x20] sm:$0xff] }
 0x5be   : > { %2044 = vmatpush.bf16.msra.mxu2 %v2035_v29  ;;  %v2027_v32 = vpack.i.b16 %v2018_v31, %v1998_v27  ;;  %v2029_v34 = vshrl.u32 %v2018_v31, 16  ;;  %2257 = vmatpush.bf16.msra.mxu0 %v4213_v25  ;;  %v4211_v27 = vld [vmem:[%s4682_s0 + $0x28] sm:$0xff]  ;;  %v4209_v29 = vld [vmem:[%s4682_s0 + $0x18] sm:$0xff] }
 0x5bf   : > { %v2054_v35 = vsel %vm1834_vm4, %v2024_v30, 0  ;;  %v4208_v30 = vld [vmem:[%s4682_s0 + $0x10] sm:$0xff]  ;;  %v4207_v31 = vld [vmem:[%s4682_s0 + $0x8] sm:$0xff] }
 0x5c0   : > { %2063 = vmatpush.bf16.msra.mxu3 %v2054_v35  ;;  %v2073_v37 = vsel %vm1834_vm4, %v2027_v32, 0  ;;  %v2030_v38 = vpack.i.b16 %v2029_v34, %v2028_v33  ;;  %v4206_v32 = vld [vmem:[%s4682_s0] sm:$0xff] }
 0x5c1   : > { %2082 = vmatpush.bf16.msrb.mxu1 %v2073_v37 }
 0x5c2   : > { %v2092_v39 = vsel %vm1834_vm4, %v2030_v38, 0  ;;  %2258 = vmatpush.bf16.msra.mxu0 %v4212_v26 }
 0x5c3   : > { %2101 = vmatpush.bf16.msrb.mxu2 %v2092_v39 }
 0x5c4   : > { %2151 = vmatpush.bf16.msrb.mxu3 %v4205_v1 }
 0x5c5   : > { %2401 = vmatpush.bf16.msra.mxu1 %v4221_v3 }
 0x5c6   : > { %2259 = vmatpush.bf16.msra.mxu0 %v4211_v27 }
 0x5c8   : > { %2152 = vmatpush.bf16.msrb.mxu3 %v4204_v2 }
 0x5c9   : > { %2402 = vmatpush.bf16.msra.mxu1 %v4220_v50 }
 0x5ca   : > { %2260 = vmatpush.bf16.msra.mxu0 %v4210_v28 }
 0x5cd   : > { %2403 = vmatpush.bf16.msra.mxu1 %v4219_v51 }
 0x5ce   : > { %2261 = vmatpush.bf16.msra.mxu0 %v4209_v29 }
 0x5d1   : > { %2404 = vmatpush.bf16.msra.mxu1 %v4218_v11 }
 0x5d2   : > { %2262 = vmatpush.bf16.msra.mxu0 %v4208_v30 }
 0x5d5   : > { %2405 = vmatpush.bf16.msra.mxu1 %v4217_v12 }
 0x5d6   : > { %2263 = vmatpush.bf16.msra.mxu0 %v4207_v31 }
 0x5d9   : > { %2406 = vmatpush.bf16.msra.mxu1 %v4216_v14 }
 0x5da   : > { %2264 = vmatpush.bf16.msra.mxu0 %v4206_v32 }
 0x5dd   : > { %2407 = vmatpush.bf16.msra.mxu1 %v4215_v16 }
 0x5e1   : > { %2408 = vmatpush.bf16.msra.mxu1 %v4214_v17 }
 0x60b   : > { %v1958_v44 = vpop.xlane.xlu0 %1957 }
 0x60c   : > { %v1949_v40 = vpop.xlane.xlu1 %1948 }
 0x60d   : > { %4402 = vrcp.f32 %v1949_v40 }
 0x613   : > { %v4403_v41 = vpop.eup %4402 }
 0x614   : > { %v1952_v42 = vpop.xlane.xlu1 %1951  ;;  %v1963_v43 = vmul.f32 %v4403_v41, %v4917_v46 }
 0x615   : > { %4404 = vrcp.f32 %v1952_v42 }
 0x616   : > { %v1967_v45 = vpack.c.bf16 %v1963_v43, %v1963_v43  ;;  %4406 = vrcp.f32 %v1958_v44 }
 0x618   : > { %3988 = vmatmul.msk.bf16.vlgmr.msra.gmra.mxu2 %vm1830_vm5, %v1967_v45 }
 0x61b   : > { %v4405_v47 = vpop.eup %4404 }
 0x61c   : > { %v1964_v49 = vmul.f32 %v4405_v47, %v4923_v15  ;;  %v1955_v52 = vpop.xlane.xlu1 %1954  ;;  %v4407_v54 = vpop.eup %4406 }
 0x61d   : > { %4408 = vrcp.f32 %v1955_v52  ;;  %v1966_v55 = vmul.f32 %v4407_v54, %v4915_v10  ;;  %v4386_v54 = vld [vmem:[%s5405_s25] ss:$0 sm:$0xff] }
 0x61e   : > { %v1968_v53 = vpack.c.bf16 %v1964_v49, %v1964_v49 }
 0x61f   : > { %v1970_v58 = vpack.c.bf16 %v1966_v55, %v1966_v55 }
 0x620   : > { %3989 = vmatmul.msk.bf16.vlgmr.msra.gmra.mxu3 %vm1830_vm5, %v1968_v53 }
 0x623   : > { %v4409_v56 = vpop.eup %4408 }
 0x624   : > { %v1965_v46 = vmul.f32 %v4409_v56, %v4935_v36 }
 0x626   : > { %v1969_v57 = vpack.c.bf16 %v1965_v46, %v1965_v46  ;;  %v4387_v46 = vld [vmem:[%s5406_s3] ss:$0 sm:$0xff] }
 0x628   : > { %3990 = vmatmul.msk.bf16.vlgmr.msrb.gmra.mxu1 %vm1830_vm5, %v1969_v57  ;;  %3991 = vmatmul.msk.bf16.vlgmr.msrb.gmra.mxu2 %vm1830_vm5, %v1970_v58 }
 0x638   : > { %2409 = vmatmul.bf16.vlgmr.msra.gmra.mxu1 %v2352_v19 }
 0x69b   : > { %v2046_v59 = vpop.f32.mrf.mxu2 }
 0x6a3   : > { %v2048_v15 = vpop.f32.mrf.mxu2  ;;  %v2065_v60 = vpop.f32.mrf.mxu3 }
 0x6a4   : > { %2108 = vrot.lane.b32.xlu2 %v2065_v60, %s4486_s27 }
 0x6a5   : > { %v2084_v61 = vpop.f32.mrf.mxu1 }
 0x6a6   : > { %2112 = vrot.lane.b32.xlu1 %v2084_v61, %s4487_s26 }
 0x6ab   : > { %v2067_v10 = vpop.f32.mrf.mxu3  ;;  %v2103_v36 = vpop.f32.mrf.mxu2 }
 0x6ac   : > { %2116 = vrot.lane.b32.xlu2 %v2103_v36, %s4488_s17 }
 0x6ad   : > { %v2086_v62 = vpop.f32.mrf.mxu1 }
 0x6b3   : > { %v2105_v0 = vpop.f32.mrf.mxu2 }
 0x6b5   : > { %v5007_v40 = vpop.f32.mrf.mxu1 }
 0x6b6   : > { %2418 = vrot.lane.b32.xlu0 %v5007_v40, %s4479_s22  ;;  %v2426_v36 = vrot.slane %v5007_v40, 4 }
 0x6bd   : > { %v2412_v42 = vpop.f32.mrf.mxu1 }
 0x6fe   : > { %v2109_v4 = vpop.permute.xlu2 %2108 }
 0x6ff   : > { %v2119_v5 = vsel %vm1830_vm5, %v2046_v59, %v2109_v4 }
 0x706   : > { %v2117_v7 = vpop.permute.xlu2 %2116 }
 0x718   : > { %v2113_v6 = vpop.permute.xlu1 %2112 }
 0x719   : > { %v2121_v8 = vsel %vm2120_vm7, %v2119_v5, %v2113_v6 }
 0x71a   : > { %v2123_v9 = vsel %vm2122_vm8, %v2121_v8, %v2117_v7 }
 0x71b   : > { %v2128_v48 = vpack.c.bf16 %v2123_v9, %v2123_v9 }
 0x71d   : > { %4000 = vmatmul.msk.bf16.vlgmr.msrb.gmra.mxu3 %vm2141_vm9, %v2128_v48 }
 0x728   : > { %v5029_v10 = vpop.permute.xlu0 %2418 }
 0x729   : > { %v2424_v0 = vrot.slane %v5029_v10, 4  ;;  %v2427_v1 = vsel %vm1173_vm3, %v5029_v10, %v2426_v36 }
 0x72a   : > { %v2435_v5 = vperm.slane %v2427_v1, %v4795_v63 }
 0x72b   : > { %v2425_v6 = vsel %vm1173_vm3, %v2424_v0, %v5007_v40 }
 0x72c   : > { %v2431_v50 = vperm.slane %v2425_v6, %v4795_v63  ;;  %v2462_v51 = vrot.slane %v2435_v5, 4 }
 0x7a0   : > { %v2154_v20 = vpop.f32.mrf.mxu3 }
 0x7a1   : > { %v4994_v22 = vadd.f32 %v4434_v21, %v2154_v20 }
 0x7a3   : > { %2161 = vadd.xlane.f32.xlu2 %v4994_v22  ;;  %v2164_v23 = vmul.f32 %v4994_v22, %v4994_v22 }
 0x7a5   : > { %2165 = vadd.xlane.f32.xlu1 %v2164_v23 }
 0x7a8   : > { %v2156_v24 = vpop.f32.mrf.mxu3 }
 0x7bb   : > { %2421 = vrot.lane.b32.xlu2 %v5007_v40, %s4481_s19 }
 0x816   : > { %v2162_v33 = vpop.xlane.xlu2 %2161 }
 0x817   : > { %v2163_v34 = vmul.f32 0.03125, %v2162_v33  ;;  %v2450_v33 = vrot.slane %v2431_v50, 4 }
 0x818   : > { %v2166_v35 = vpop.xlane.xlu1 %2165 }
 0x819   : > { %v2168_v37 = vmul.f32 %v2163_v34, %v2163_v34  ;;  %v2167_v38 = vmul.f32 0.03125, %v2166_v35  ;;  %v2170_v53 = vsub.f32 %v4994_v22, %v2163_v34 }
 0x81b   : > { %v2169_v39 = vsub.f32 %v2167_v38, %v2168_v37 }
 0x81d   : > { %v2171_v41 = vadd.f32 1e-05, %v2169_v39 }
 0x81e   : > { %v5032_v62 = vpop.permute.xlu2 %2421 }
 0x81f   : > { %4410 = vrsqrt.f32 %v2171_v41  ;;  %vm2178_vm11 = vweird.f32 %v2171_v41  ;;  %v2436_v3 = vrot.slane %v5032_v62, 4 }
 0x825   : > { %v4411_v43 = vpop.eup %4410 }
 0x826   : > { %v2173_v44 = vmul.f32 %v4411_v43, %v2171_v41  ;;  %vm2179_vm10 = vweird.f32 %v4411_v43 }
 0x827   : > { %vm2180_vm12 = vmor %vm2178_vm11, %vm2179_vm10 }
 0x828   : > { %v2174_v45 = vmul.f32 %v4411_v43, %v2173_v44 }
 0x82a   : > { %v2175_v47 = vmul.f32 0.5, %v2174_v45 }
 0x82c   : > { %v2176_v49 = vsub.f32 1.5, %v2175_v47 }
 0x82e   : > { %v2177_v52 = vmul.f32 %v4411_v43, %v2176_v49 }
 0x830   : > { %v2181_v55 = vsel %vm2180_vm12, %v4411_v43, %v2177_v52 }
 0x831   : > { %v2182_v56 = vmul.f32 %v2181_v55, %v2170_v53 }
 0x833   : > { %v2186_v57 = vmul.f32 %v4386_v54, %v2182_v56 }
 0x835   : > { %v2190_v58 = vadd.f32 %v4387_v46, %v2186_v57 }
 0x837   : > { %v2208_v59 = vpack.c.bf16 %v2190_v58, %v2190_v58 }
 0x839   : > { %2265 = vmatmul.bf16.vlgmr.msra.gmra.mxu0 %v2208_v59 }
 0x8b6   : > { %v5024_v15 = vpop.f32.mrf.mxu0 }
 0x8b7   : > { %v4345_v60 = vpack.i.bf16 %v5024_v15, %v5007_v40 }
 0x8b9   : > { %4346 = vrot.lane.b32.xlu0 %v4345_v60, %s4480_s2 }
 0x8be   : > { %v2268_v61 = vpop.f32.mrf.mxu0 }
 0x92b   : > { %v5037_v2 = vpop.permute.xlu0 %4346 }
 0x92c   : > { %v5041_v4 = vunpack.i.l.bf16 %v5037_v2 }
 0x92e   : > { %v2437_v7 = vsel %vm1173_vm3, %v2436_v3, %v5041_v4  ;;  %v2438_v8 = vrot.slane %v5041_v4, 4 }
 0x92f   : > { %v2443_v9 = vperm.slane %v2437_v7, %v4795_v63 }
 0x930   : > { %v2439_v48 = vsel %vm1173_vm3, %v5032_v62, %v2438_v8 }
 0x931   : > { %v2447_v11 = vperm.slane %v2439_v48, %v4795_v63  ;;  %v2448_v12 = vrot.slane %v2443_v9, 4  ;;  %v2451_v37 = vsel %vm1173_vm3, %v2443_v9, %v2450_v33 }
 0x932   : > { %v2459_v38 = vperm.slane %v2451_v37, %v4804_v13 }
 0x933   : > { %v2460_v14 = vrot.slane %v2447_v11, 4  ;;  %v2463_v16 = vsel %vm1173_vm3, %v2447_v11, %v2462_v51  ;;  %v2449_v17 = vsel %vm1173_vm3, %v2448_v12, %v2431_v50 }
 0x934   : > { %v2471_v18 = vperm.slane %v2463_v16, %v4804_v13  ;;  %v2455_v19 = vperm.slane %v2449_v17, %v4804_v13  ;;  %v2474_v39 = vrot.slane %v2459_v38, 4  ;;  %v2558_v42 = vpack.c.bf16 %v2459_v38, %v2459_v38 }
 0x935   : > { %v2461_v20 = vsel %vm1173_vm3, %v2460_v14, %v2435_v5 }
 0x936   : > { %v2478_v21 = vrot.slane %v2471_v18, 4  ;;  %v2472_v23 = vrot.slane %v2455_v19, 4  ;;  %v2467_v24 = vperm.slane %v2461_v20, %v4804_v13  ;;  %v2562_v27 = vpack.c.bf16 %v2471_v18, %v2471_v18 }
 0x937   : > { %v2556_v31 = vpack.c.bf16 %v2455_v19, %v2455_v19  ;;  %v2475_v41 = vsel %vm1173_vm3, 0.0, %v2474_v39 }
 0x938   : > { %v2479_v25 = vsel %vm1173_vm3, 0.0, %v2478_v21  ;;  %v2473_v26 = vsel %vm1173_vm3, 0.0, %v2472_v23  ;;  %v2476_v30 = vrot.slane %v2467_v24, 4  ;;  %v2560_v34 = vpack.c.bf16 %v2467_v24, %v2467_v24 }
 0x939   : > { %v2563_v28 = vpack.c.bf16 %v2479_v25, %v2479_v25  ;;  %v2557_v29 = vpack.c.bf16 %v2473_v26, %v2473_v26  ;;  %v2559_v43 = vpack.c.bf16 %v2475_v41, %v2475_v41 }
 0x93a   : > { %v2477_v32 = vsel %vm1173_vm3, 0.0, %v2476_v30 }
 0x93b   : > { %4356 = vxpose.binary.xlu2.c.b16.start.end [1/2] (short) (narrow) %v2563_v28, %v2562_v27, 16  ;;  %v2561_v35 = vpack.c.bf16 %v2477_v32, %v2477_v32 }
 0x93c   : > { %4353 = vxpose.binary.xlu1.c.b16.start.end [1/2] (short) (narrow) %v2557_v29, %v2556_v31, 16 }
 0x93d   : > { %4350 = vxpose.binary.xlu0.c.b16.start.end [1/2] (short) (narrow) %v2561_v35, %v2560_v34, 16 }
 0x94d   : > { %4359 = vxpose.binary.xlu0.c.b16.start.end [1/2] (short) (narrow) %v2559_v43, %v2558_v42, 16 }
 0x9a4   : > { %2277 = vrot.lane.b32.xlu2 %v5024_v15, %s4481_s19 }
 0x9bb   : > { %2274 = vrot.lane.b32.xlu0 %v5024_v15, %s4479_s22  ;;  %s5409_s22 = sld [smem:[#allocation22_spill]] }
 0x9c1   : > { %s5410_s2 = scalar_lea.vmem %s5409_s22, %s4639_s1 }
 0x9dc   : > { %v4357_v52 = vpop.trf.xlu2 }
 0x9dd   : > { %v2750_v54 = vrot.slane %v4357_v52, 4  ;;  %v2282_v52 = vrot.slane %v5024_v15, 4 }
 0x9e4   : > { %v4358_v36 = vpop.trf.xlu2 }
 0x9e5   : > { %v2778_v1 = vrot.slane %v4358_v36, 4 }
 0x9e8   : > { %v4354_v45 = vpop.trf.xlu1 }
 0x9e9   : > { %v4351_v44 = vpop.trf.xlu0 }
 0x9ea   : > { %v2744_v47 = vrot.slane %v4351_v44, 4 }
 0x9ec   : > { %v2745_v53 = vsel %vm1173_vm3, %v2744_v47, %v4354_v45 }
 0x9ed   : > { %v2749_v55 = vperm.slane %v2745_v53, %v4795_v63  ;;  %v4349_v53 = vunpack.i.h.bf16 %v5037_v2 }
 0x9ef   : > { %v2758_v59 = vrot.slane %v2749_v55, 4 }
 0x9f0   : > { %v4355_v46 = vpop.trf.xlu1 }
 0x9f1   : > { %v4352_v49 = vpop.trf.xlu0 }
 0x9f2   : > { %v2772_v56 = vrot.slane %v4352_v49, 4 }
 0x9f4   : > { %v2773_v61 = vsel %vm1173_vm3, %v2772_v56, %v4355_v46 }
 0x9f5   : > { %v2777_v3 = vperm.slane %v2773_v61, %v4795_v63 }
 0x9f7   : > { %v2786_v8 = vrot.slane %v2777_v3, 4 }
 0x9f9   : > { %v4360_v57 = vpop.trf.xlu0 }
 0x9fa   : > { %v2751_v58 = vsel %vm1173_vm3, %v2750_v54, %v4360_v57 }
 0x9fb   : > { %v2755_v60 = vperm.slane %v2751_v58, %v4795_v63  ;;  %v2294_v58 = vrot.slane %v4349_v53, 4 }
 0x9fd   : > { %v2759_v0 = vsel %vm1173_vm3, %v2755_v60, %v2758_v59  ;;  %v2756_v16 = vrot.slane %v2755_v60, 4 }
 0x9fe   : > { %v2767_v5 = vperm.slane %v2759_v0, %v4804_v13  ;;  %v2278_v46 = vpop.permute.xlu2 %2277 }
 0x9ff   : > { %v2757_v21 = vsel %vm1173_vm3, %v2756_v16, %v2749_v55  ;;  %v2292_v60 = vrot.slane %v2278_v46, 4  ;;  %v2295_v61 = vsel %vm1173_vm3, %v2278_v46, %v2294_v58 }
 0xa00   : > { %v2770_v48 = vrot.slane %v2767_v5, 4  ;;  %v2763_v26 = vperm.slane %v2757_v21, %v4804_v13  ;;  %v2820_v37 = vshrl.u32 %v2767_v5, 16 }
 0xa01   : > { %v4361_v6 = vpop.trf.xlu0  ;;  %v2293_v2 = vsel %vm1173_vm3, %v2292_v60, %v4349_v53 }
 0xa02   : > { %v2779_v7 = vsel %vm1173_vm3, %v2778_v1, %v4361_v6  ;;  %v2771_v12 = vsel %vm1173_vm3, 0, %v2770_v48  ;;  %v2768_v28 = vrot.slane %v2763_v26, 4  ;;  %v2804_v42 = vshrl.u32 %v2763_v26, 16 }
 0xa03   : > { %v2783_v9 = vperm.slane %v2779_v7, %v4795_v63  ;;  %v2828_v19 = vshrl.u32 %v2771_v12, 16  ;;  %v2303_v1 = vperm.slane %v2295_v61, %v4795_v63  ;;  %v2299_v7 = vperm.slane %v2293_v2, %v4795_v63 }
 0xa04   : > { %v2769_v30 = vsel %vm1173_vm3, 0, %v2768_v28 }
 0xa05   : > { %v2787_v50 = vsel %vm1173_vm3, %v2783_v9, %v2786_v8  ;;  %v2784_v11 = vrot.slane %v2783_v9, 4  ;;  %v2812_v32 = vshrl.u32 %v2769_v30, 16  ;;  %v2316_v9 = vrot.slane %v2303_v1, 4 }
 0xa06   : > { %v2795_v51 = vperm.slane %v2787_v50, %v4804_v13 }
 0xa07   : > { %v2785_v18 = vsel %vm1173_vm3, %v2784_v11, %v2777_v3 }
 0xa08   : > { %v2798_v14 = vrot.slane %v2795_v51, 4  ;;  %v2791_v25 = vperm.slane %v2785_v18, %v4804_v13  ;;  %v2821_v35 = vshrl.u32 %v2795_v51, 16  ;;  %v2818_v38 = vpack.i.b16 %v2795_v51, %v2767_v5 }
 0xa0a   : > { %v2799_v17 = vsel %vm1173_vm3, 0, %v2798_v14  ;;  %v2796_v27 = vrot.slane %v2791_v25, 4  ;;  %v2822_v39 = vpack.i.b16 %v2821_v35, %v2820_v37  ;;  %v2805_v41 = vshrl.u32 %v2791_v25, 16 }
 0xa0b   : > { %v2829_v20 = vshrl.u32 %v2799_v17, 16  ;;  %v2826_v23 = vpack.i.b16 %v2799_v17, %v2771_v12  ;;  %v2802_v43 = vpack.i.b16 %v2791_v25, %v2763_v26  ;;  %v2304_v12 = vrot.slane %v2299_v7, 4 }
 0xa0c   : > { %v2797_v29 = vsel %vm1173_vm3, 0, %v2796_v27  ;;  %v2806_v44 = vpack.i.b16 %v2805_v41, %v2804_v42 }
 0xa0d   : > { %v2830_v24 = vpack.i.b16 %v2829_v20, %v2828_v19  ;;  %v2813_v31 = vshrl.u32 %v2797_v29, 16  ;;  %v2810_v33 = vpack.i.b16 %v2797_v29, %v2769_v30 }
 0xa0f   : > { %4362 = vxpose.binary.xlu1.c.b16.start.end [1/2] (short) (narrow) %v2830_v24, %v2826_v23, 16  ;;  %v2814_v34 = vpack.i.b16 %v2813_v31, %v2812_v32 }
 0xa1f   : > { %4365 = vxpose.binary.xlu1.c.b16.start.end [1/2] (short) (narrow) %v2814_v34, %v2810_v33, 16 }
 0xa2d   : > { %v2275_v49 = vpop.permute.xlu0 %2274 }
 0xa2e   : > { %v2280_v54 = vrot.slane %v2275_v49, 4  ;;  %v2283_v55 = vsel %vm1173_vm3, %v2275_v49, %v2282_v52 }
 0xa2f   : > { %4368 = vxpose.binary.xlu1.c.b16.start.end [1/2] (short) (narrow) %v2822_v39, %v2818_v38, 16  ;;  %v2291_v57 = vperm.slane %v2283_v55, %v4795_v63 }
 0xa30   : > { %v2281_v59 = vsel %vm1173_vm3, %v2280_v54, %v5024_v15 }
 0xa31   : > { %v2287_v36 = vperm.slane %v2281_v59, %v4795_v63  ;;  %v2318_v0 = vrot.slane %v2291_v57, 4  ;;  %v2317_v48 = vsel %vm1173_vm3, %v2316_v9, %v2291_v57 }
 0xa32   : > { %v2323_v14 = vperm.slane %v2317_v48, %v4804_v13 }
 0xa33   : > { %v2306_v5 = vrot.slane %v2287_v36, 4  ;;  %v2319_v6 = vsel %vm1173_vm3, %v2303_v1, %v2318_v0  ;;  %v2305_v16 = vsel %vm1173_vm3, %v2304_v12, %v2287_v36 }
 0xa34   : > { %v2327_v8 = vperm.slane %v2319_v6, %v4804_v13  ;;  %v2311_v19 = vperm.slane %v2305_v16, %v4804_v13  ;;  %v2332_v20 = vrot.slane %v2323_v14, 4  ;;  %v2552_v37 = vpack.c.bf16 %v2323_v14, %v2323_v14 }
 0xa35   : > { %v2307_v15 = vsel %vm1173_vm3, %v2299_v7, %v2306_v5 }
 0xa36   : > { %v2315_v50 = vperm.slane %v2307_v15, %v4804_v13  ;;  %v2334_v51 = vrot.slane %v2327_v8, 4  ;;  %v2554_v24 = vpack.c.bf16 %v2327_v8, %v2327_v8  ;;  %v2328_v27 = vrot.slane %v2311_v19, 4 }
 0xa37   : > { %v2333_v28 = vsel %vm1173_vm3, 0.0, %v2332_v20  ;;  %v2548_v42 = vpack.c.bf16 %v2311_v19, %v2311_v19  ;;  %v2564_v54 = vrot.slane %v2552_v37, 4 }
 0xa38   : > { %v2330_v17 = vrot.slane %v2315_v50, 4  ;;  %v2335_v18 = vsel %vm1173_vm3, 0.0, %v2334_v51  ;;  %v2550_v32 = vpack.c.bf16 %v2315_v50, %v2315_v50  ;;  %v2570_v33 = vrot.slane %v2554_v24, 4 }
 0xa39   : > { %v2555_v21 = vpack.c.bf16 %v2335_v18, %v2335_v18  ;;  %v2553_v34 = vpack.c.bf16 %v2333_v28, %v2333_v28  ;;  %v2329_v35 = vsel %vm1173_vm3, 0.0, %v2328_v27  ;;  %v2565_v61 = vsel %vm1173_vm3, %v2564_v54, %v2548_v42 }
 0xa3a   : > { %v2331_v23 = vsel %vm1173_vm3, 0.0, %v2330_v17  ;;  %v2569_v7 = vperm.slane %v2565_v61, %v4795_v63 }
 0xa3b   : > { %v2551_v29 = vpack.c.bf16 %v2331_v23, %v2331_v23  ;;  %v2590_v30 = vrot.slane %v2555_v21, 4  ;;  %v2584_v49 = vrot.slane %v2553_v34, 4 }
 0xa3d   : > { %v2591_v39 = vsel %vm1173_vm3, %v2590_v30, %v2551_v29 }
 0xa3e   : > { %v2595_v55 = vperm.slane %v2591_v39, %v4795_v63 }
 0xa3f   : > { %4371 = vxpose.binary.xlu1.c.b16.start.end [1/2] (short) (narrow) %v2806_v44, %v2802_v43, 16  ;;  %v2571_v43 = vsel %vm1173_vm3, %v2570_v33, %v2550_v32 }
 0xa40   : > { %v2575_v57 = vperm.slane %v2571_v43, %v4795_v63  ;;  %v2596_v36 = vrot.slane %v2595_v55, 4 }
 0xa42   : > { %v2576_v0 = vrot.slane %v2575_v57, 4 }
 0xa44   : > { %v2577_v48 = vsel %vm1173_vm3, %v2576_v0, %v2569_v7 }
 0xa45   : > { %v2581_v16 = vperm.slane %v2577_v48, %v4804_v13 }
 0xabb   : > { %v4363_v45 = vpop.trf.xlu1 }
 0xabc   : > { %v2966_v26 = vrot.slane %v4363_v45, 4  ;;  %v2549_v45 = vpack.c.bf16 %v2329_v35, %v2329_v35 }
 0xabe   : > { %v2585_v60 = vsel %vm1173_vm3, %v2584_v49, %v2549_v45 }
 0xabf   : > { %v2589_v5 = vperm.slane %v2585_v60, %v4795_v63 }
 0xac1   : > { %v2597_v15 = vsel %vm1173_vm3, %v2596_v36, %v2589_v5  ;;  %v4379_v36 = vpack.i.bf16 %v5032_v62, %v5029_v10 }
 0xac2   : > { %v2601_v12 = vperm.slane %v2597_v15, %v4804_v13 }
 0xac3   : > { %v5090_v47 = vpop.trf.xlu1 }
 0xac4   : > { %v2986_v52 = vrot.slane %v5090_v47, 4  ;;  %v2606_v30 = vpack.i.b16 %v2601_v12, %v2581_v16  ;;  %v2602_v37 = vrot.slane %v2601_v12, 4 }
 0xac6   : > { %v2603_v39 = vsel %vm1173_vm3, 0, %v2602_v37 }
 0xac7   : > { %v2614_v42 = vshrl.u32 %v2603_v39, 16 }
 0xacb   : > { %v4366_v56 = vpop.trf.xlu1 }
 0xacc   : > { %v2967_v31 = vsel %vm1173_vm3, %v2966_v26, %v4366_v56 }
 0xacd   : > { %v2971_v38 = vperm.slane %v2967_v31, %v4795_v63  ;;  %v2607_v31 = vshrl.u32 %v2581_v16, 16 }
 0xacf   : > { %v2972_v56 = vrot.slane %v2971_v38, 4  ;;  %v2582_v38 = vrot.slane %v2581_v16, 4 }
 0xad3   : > { %v4367_v3 = vpop.trf.xlu1 }
 0xad4   : > { %v2987_v58 = vsel %vm1173_vm3, %v2986_v52, %v4367_v3 }
 0xad5   : > { %v2991_v47 = vperm.slane %v2987_v58, %v4795_v63 }
 0xad7   : > { %v2992_v8 = vrot.slane %v2991_v47, 4 }
 0xadb   : > { %v4369_v11 = vpop.trf.xlu1 }
 0xadc   : > { %v2960_v41 = vrot.slane %v4369_v11, 4 }
 0xae3   : > { %v4370_v25 = vpop.trf.xlu1 }
 0xae4   : > { %v2980_v1 = vrot.slane %v4370_v25, 4  ;;  %v2608_v25 = vshrl.u32 %v2601_v12, 16 }
 0xae6   : > { %v2609_v34 = vpack.i.b16 %v2608_v25, %v2607_v31 }
 0xaeb   : > { %v4372_v44 = vpop.trf.xlu1 }
 0xaec   : > { %v2961_v53 = vsel %vm1173_vm3, %v2960_v41, %v4372_v44  ;;  %v2583_v41 = vsel %vm1173_vm3, 0, %v2582_v38 }
 0xaed   : > { %v2965_v46 = vperm.slane %v2961_v53, %v4795_v63  ;;  %v2612_v43 = vpack.i.b16 %v2603_v39, %v2583_v41  ;;  %v2613_v44 = vshrl.u32 %v2583_v41, 16 }
 0xaef   : > { %v2973_v59 = vsel %vm1173_vm3, %v2972_v56, %v2965_v46  ;;  %v2615_v45 = vpack.i.b16 %v2614_v42, %v2613_v44 }
 0xaf0   : > { %v2977_v2 = vperm.slane %v2973_v59, %v4804_v13 }
 0xaf2   : > { %v2978_v50 = vrot.slane %v2977_v2, 4  ;;  %v3003_v14 = vshrl.u32 %v2977_v2, 16 }
 0xaf3   : > { %v4373_v6 = vpop.trf.xlu1 }
 0xaf4   : > { %v2981_v3 = vsel %vm1173_vm3, %v2980_v1, %v4373_v6  ;;  %v2979_v19 = vsel %vm1173_vm3, 0, %v2978_v50  ;;  %v4374_v1 = vpack.i.bf16 %v5041_v4, %v5007_v40 }
 0xaf5   : > { %v2985_v9 = vperm.slane %v2981_v3, %v4795_v63  ;;  %v3009_v27 = vshrl.u32 %v2979_v19, 16 }
 0xaf7   : > { %v2993_v51 = vsel %vm1173_vm3, %v2992_v8, %v2985_v9 }
 0xaf8   : > { %v2997_v11 = vperm.slane %v2993_v51, %v4804_v13 }
 0xafa   : > { %v3002_v17 = vpack.i.b16 %v2997_v11, %v2977_v2  ;;  %v3004_v18 = vshrl.u32 %v2997_v11, 16  ;;  %v2998_v20 = vrot.slane %v2997_v11, 4 }
 0xafc   : > { %v3016_v21 = vsel %vm1834_vm4, %v3002_v17, 0  ;;  %v3005_v23 = vpack.i.b16 %v3004_v18, %v3003_v14  ;;  %v2999_v24 = vsel %vm1173_vm3, 0, %v2998_v20 }
 0xafd   : > { %3025 = vmatpush.bf16.msra.mxu2 %v3016_v21  ;;  %v3008_v26 = vpack.i.b16 %v2999_v24, %v2979_v19  ;;  %v3010_v28 = vshrl.u32 %v2999_v24, 16 }
 0xafe   : > { %v3035_v29 = vsel %vm1834_vm4, %v3005_v23, 0 }
 0xaff   : > { %3044 = vmatpush.bf16.msra.mxu3 %v3035_v29  ;;  %v3054_v32 = vsel %vm1834_vm4, %v3008_v26, 0  ;;  %v3011_v33 = vpack.i.b16 %v3010_v28, %v3009_v27 }
 0xb00   : > { %4065 = vmatmul.msk.bf16.vlgmr.msra.gmra.mxu2 %vm1830_vm5, %v2606_v30 }
 0xb01   : > { %3063 = vmatpush.bf16.msrb.mxu2 %v3054_v32  ;;  %v3073_v35 = vsel %vm1834_vm4, %v3011_v33, 0 }
 0xb02   : > { %4066 = vmatmul.msk.bf16.vlgmr.msra.gmra.mxu3 %vm1830_vm5, %v2609_v34 }
 0xb03   : > { %3082 = vmatpush.bf16.msrb.mxu3 %v3073_v35 }
 0xb10   : > { %4067 = vmatmul.msk.bf16.vlgmr.msrb.gmra.mxu2 %vm1830_vm5, %v2612_v43 }
 0xb12   : > { %4068 = vmatmul.msk.bf16.vlgmr.msrb.gmra.mxu3 %vm1830_vm5, %v2615_v45 }
 0xb83   : > { %v3027_v49 = vpop.f32.mrf.mxu2 }
 0xb84   : > { %v5161_v2 = vmul.f32 0.35355338, %v3027_v49 }
 0xb85   : > { %v3046_v52 = vpop.f32.mrf.mxu3 }
 0xb86   : > { %v3089_v53 = vmul.f32 0.35355338, %v3046_v52  ;;  %v3092_v5 = vsel %vm1830_vm5, %v5161_v2, -inf }
 0xb88   : > { %v3095_v54 = vsel %vm1830_vm5, %v3089_v53, -inf }
 0xb89   : > { %3096 = vmax.xlane.f32.xlu0 %v3095_v54 }
 0xb8b   : > { %v3029_v55 = vpop.f32.mrf.mxu2 }
 0xb8d   : > { %v3048_v56 = vpop.f32.mrf.mxu3 }
 0xb93   : > { %v3065_v46 = vpop.f32.mrf.mxu2 }
 0xb94   : > { %v3090_v57 = vmul.f32 0.35355338, %v3065_v46 }
 0xb95   : > { %v3084_v58 = vpop.f32.mrf.mxu3 }
 0xb96   : > { %v3091_v59 = vmul.f32 0.35355338, %v3084_v58  ;;  %v3098_v60 = vsel %vm1830_vm5, %v3090_v57, -inf }
 0xb97   : > { %3099 = vmax.xlane.f32.xlu1 %v3098_v60 }
 0xb98   : > { %v3101_v61 = vsel %vm1830_vm5, %v3091_v59, -inf }
 0xb99   : > { %3102 = vmax.xlane.f32.xlu2 %v3101_v61 }
 0xb9b   : > { %v3067_v47 = vpop.f32.mrf.mxu2 }
 0xb9d   : > { %4380 = vrot.lane.b32.xlu0 %v4379_v36, %s4482_s18  ;;  %v3086_v0 = vpop.f32.mrf.mxu3 }
 0xbb1   : > { %4375 = vrot.lane.b32.xlu2 %v4374_v1, %s4482_s18 }
 0xbc7   : > { %3093 = vmax.xlane.f32.xlu0 %v3092_v5 }
 0xbfc   : > { %v3097_v6 = vpop.xlane.xlu0 %3096 }
 0xbfd   : > { %v3105_v9 = vsub.f32 %v3089_v53, %v3097_v6 }
 0xbff   : > { %v3110_v50 = vmul.f32 1.442695, %v3105_v9 }
 0xc0a   : > { %v3100_v7 = vpop.xlane.xlu1 %3099 }
 0xc0b   : > { %v3106_v3 = vsub.f32 %v3090_v57, %v3100_v7 }
 0xc0c   : > { %v3103_v8 = vpop.xlane.xlu2 %3102 }
 0xc0d   : > { %v3112_v10 = vmul.f32 1.442695, %v3106_v3  ;;  %v3107_v62 = vsub.f32 %v3091_v59, %v3103_v8 }
 0xc0f   : > { %4412 = vpow2.f32 %v3112_v10  ;;  %v3114_v15 = vmul.f32 1.442695, %v3107_v62  ;;  %v4381_v48 = vpop.permute.xlu0 %4380 }
 0xc10   : > { %v4383_v40 = vunpack.i.h.bf16 %v4381_v48  ;;  %v4382_v4 = vunpack.i.l.bf16 %v4381_v48 }
 0xc11   : > { %4414 = vpow2.f32 %v3114_v15 }
 0xc12   : > { %v2504_v12 = vrot.slane %v4383_v40, 4  ;;  %v2492_v14 = vrot.slane %v4382_v4, 4  ;;  %4416 = vpow2.f32 %v3110_v50 }
 0xc14   : > { %v4376_v51 = vpop.permute.xlu2 %4375 }
 0xc15   : > { %v5165_v11 = vpop.eup %4412  ;;  %v4378_v16 = vunpack.i.h.bf16 %v4376_v51  ;;  %v4377_v17 = vunpack.i.l.bf16 %v4376_v51 }
 0xc16   : > { %v3122_v18 = vsel %vm1830_vm5, %v5165_v11, 0.0 }
 0xc17   : > { %v5169_v19 = vpop.eup %4414  ;;  %v2505_v20 = vsel %vm1173_vm3, %v2504_v12, %v4378_v16  ;;  %v2506_v21 = vrot.slane %v4378_v16, 4  ;;  %v2493_v23 = vsel %vm1173_vm3, %v2492_v14, %v4377_v17  ;;  %v2494_v24 = vrot.slane %v4377_v17, 4  ;;  %3123 = vadd.xlane.f32.xlu2 %v3122_v18 }
 0xc18   : > { %v2511_v25 = vperm.slane %v2505_v20, %v4795_v63  ;;  %v2499_v26 = vperm.slane %v2493_v23, %v4795_v63  ;;  %v3125_v27 = vsel %vm1830_vm5, %v5169_v19, 0.0  ;;  %v5181_v34 = vpop.eup %4416 }
 0xc19   : > { %v2507_v28 = vsel %vm1173_vm3, %v4383_v40, %v2506_v21  ;;  %v2495_v29 = vsel %vm1173_vm3, %v4382_v4, %v2494_v24  ;;  %3126 = vadd.xlane.f32.xlu1 %v3125_v27  ;;  %v3119_v54 = vsel %vm1830_vm5, %v5181_v34, 0.0 }
 0xc1a   : > { %v2515_v30 = vperm.slane %v2507_v28, %v4795_v63  ;;  %v2516_v31 = vrot.slane %v2511_v25, 4  ;;  %v2503_v32 = vperm.slane %v2495_v29, %v4795_v63  ;;  %v2518_v33 = vrot.slane %v2499_v26, 4 }
 0xc1c   : > { %v2528_v35 = vrot.slane %v2515_v30, 4  ;;  %v2517_v37 = vsel %vm1173_vm3, %v2516_v31, %v2499_v26  ;;  %v2519_v38 = vsel %vm1173_vm3, %v2511_v25, %v2518_v33  ;;  %v2530_v39 = vrot.slane %v2503_v32, 4 }
 0xc1d   : > { %v2523_v41 = vperm.slane %v2517_v37, %v4804_v13  ;;  %v2527_v42 = vperm.slane %v2519_v38, %v4804_v13 }
 0xc1e   : > { %v2529_v43 = vsel %vm1173_vm3, %v2528_v35, %v2503_v32  ;;  %v2531_v44 = vsel %vm1173_vm3, %v2515_v30, %v2530_v39 }
 0xc1f   : > { %v2535_v45 = vperm.slane %v2529_v43, %v4804_v13  ;;  %v2539_v49 = vperm.slane %v2531_v44, %v4804_v13  ;;  %v2540_v52 = vrot.slane %v2523_v41, 4  ;;  %v2542_v53 = vrot.slane %v2527_v42, 4 }
 0xc20   : > { %v3140_v36 = vpack.c.bf16 %v2523_v41, %v2523_v41  ;;  %v3142_v47 = vpack.c.bf16 %v2527_v42, %v2527_v42 }
 0xc21   : > { %v2544_v55 = vrot.slane %v2535_v45, 4  ;;  %v2546_v56 = vrot.slane %v2539_v49, 4  ;;  %3120 = vadd.xlane.f32.xlu1 %v3119_v54  ;;  %v2541_v46 = vsel %vm1173_vm3, 0.0, %v2540_v52  ;;  %v2543_v57 = vsel %vm1173_vm3, 0.0, %v2542_v53 }
 0xc22   : > { %v3144_v58 = vpack.c.bf16 %v2535_v45, %v2535_v45  ;;  %v3146_v59 = vpack.c.bf16 %v2539_v49, %v2539_v49  ;;  %v3141_v7 = vpack.c.bf16 %v2541_v46, %v2541_v46  ;;  %v3143_v3 = vpack.c.bf16 %v2543_v57, %v2543_v57 }
 0xc23   : > { %v2545_v60 = vsel %vm1173_vm3, 0.0, %v2544_v55  ;;  %v2547_v61 = vsel %vm1173_vm3, 0.0, %v2546_v56 }
 0xc24   : > { %v3145_v0 = vpack.c.bf16 %v2545_v60, %v2545_v60  ;;  %v3147_v1 = vpack.c.bf16 %v2547_v61, %v2547_v61  ;;  %v3148_v5 = vrot.slane %v3144_v58, 4  ;;  %v3154_v6 = vrot.slane %v3146_v59, 4 }
 0xc26   : > { %v3168_v8 = vrot.slane %v3145_v0, 4  ;;  %v3174_v10 = vrot.slane %v3147_v1, 4  ;;  %v3149_v62 = vsel %vm1173_vm3, %v3148_v5, %v3140_v36  ;;  %v3155_v9 = vsel %vm1173_vm3, %v3154_v6, %v3142_v47 }
 0xc27   : > { %v3159_v15 = vperm.slane %v3155_v9, %v4795_v63  ;;  %v3153_v4 = vperm.slane %v3149_v62, %v4795_v63 }
 0xc28   : > { %v3169_v48 = vsel %vm1173_vm3, %v3168_v8, %v3141_v7  ;;  %v3175_v40 = vsel %vm1173_vm3, %v3174_v10, %v3143_v3  ;;  %v4223_v7 = vld [vmem:[%s4692_s7 + $0x8] sm:$0xff]  ;;  %v4222_v3 = vld [vmem:[%s4692_s7] sm:$0xff] }
 0xc29   : > { %v3160_v50 = vrot.slane %v3159_v15, 4  ;;  %v3179_v51 = vperm.slane %v3175_v40, %v4795_v63  ;;  %v3173_v14 = vperm.slane %v3169_v48, %v4795_v63 }
 0xc2b   : > { %v3161_v12 = vsel %vm1173_vm3, %v3160_v50, %v3153_v4  ;;  %v3180_v16 = vrot.slane %v3179_v51, 4 }
 0xc2c   : > { %v3165_v17 = vperm.slane %v3161_v12, %v4804_v13 }
 0xc2d   : > { %v3181_v18 = vsel %vm1173_vm3, %v3180_v16, %v3173_v14  ;;  %v4231_v14 = vld [vmem:[%s4705_s10 + $0x38] sm:$0xff]  ;;  %v4230_v16 = vld [vmem:[%s4705_s10 + $0x30] sm:$0xff] }
 0xc2e   : > { %v3185_v20 = vperm.slane %v3181_v18, %v4804_v13  ;;  %v3166_v21 = vrot.slane %v3165_v17, 4  ;;  %v3191_v23 = vshrl.u32 %v3165_v17, 16  ;;  %v4228_v18 = vld [vmem:[%s4705_s10 + $0x20] sm:$0xff] }
 0xc30   : > { %v3190_v24 = vpack.i.b16 %v3185_v20, %v3165_v17  ;;  %v3192_v25 = vshrl.u32 %v3185_v20, 16  ;;  %v3167_v26 = vsel %vm1173_vm3, 0, %v3166_v21  ;;  %v3186_v27 = vrot.slane %v3185_v20, 4  ;;  %v4229_v17 = vld [vmem:[%s4705_s10 + $0x28] sm:$0xff]  ;;  %v4227_v20 = vld [vmem:[%s4705_s10 + $0x18] sm:$0xff] }
 0xc31   : > { %v3197_v31 = vshrl.u32 %v3167_v26, 16  ;;  %v4225_v21 = vld [vmem:[%s4705_s10 + $0x8] sm:$0xff] }
 0xc32   : > { %v3204_v28 = vsel %vm1834_vm4, %v3190_v24, 0  ;;  %v3193_v29 = vpack.i.b16 %v3192_v25, %v3191_v23  ;;  %v3187_v30 = vsel %vm1173_vm3, 0, %v3186_v27  ;;  %v4224_v23 = vld [vmem:[%s4705_s10] sm:$0xff] }
 0xc33   : > { %3213 = vmatpush.bf16.msrb.mxu0 %v3204_v28  ;;  %v3196_v63 = vpack.i.b16 %v3187_v30, %v3167_v26  ;;  %v3198_v32 = vshrl.u32 %v3187_v30, 16 }
 0xc34   : > { %v3223_v33 = vsel %vm1834_vm4, %v3193_v29, 0 }
 0xc35   : > { %3232 = vmatpush.bf16.msrb.mxu1 %v3223_v33  ;;  %v3242_v13 = vsel %vm1834_vm4, %v3196_v63, 0  ;;  %v3199_v35 = vpack.i.b16 %v3198_v32, %v3197_v31 }
 0xc36   : > { %3251 = vmatpush.bf16.msra.mxu2 %v3242_v13 }
 0xc37   : > { %v3261_v37 = vsel %vm1834_vm4, %v3199_v35, 0  ;;  %3317 = vmatpush.bf16.msra.mxu0 %v4223_v7 }
 0xc38   : > { %3270 = vmatpush.bf16.msra.mxu3 %v3261_v37 }
 0xc39   : > { %3426 = vmatpush.bf16.msra.mxu1 %v4231_v14 }
 0xc3a   : > { %v3094_v38 = vpop.xlane.xlu0 %3093 }
 0xc3b   : > { %v3104_v39 = vsub.f32 %v5161_v2, %v3094_v38  ;;  %3318 = vmatpush.bf16.msra.mxu0 %v4222_v3  ;;  %v4388_v38 = vld [vmem:[%s5408_s4] ss:$0 sm:$0xff] }
 0xc3d   : > { %v3108_v41 = vmul.f32 1.442695, %v3104_v39  ;;  %3427 = vmatpush.bf16.msra.mxu1 %v4230_v16 }
 0xc3f   : > { %4418 = vpow2.f32 %v3108_v41 }
 0xc41   : > { %3428 = vmatpush.bf16.msra.mxu1 %v4229_v17 }
 0xc45   : > { %v4419_v42 = vpop.eup %4418  ;;  %3429 = vmatpush.bf16.msra.mxu1 %v4228_v18 }
 0xc46   : > { %v3116_v43 = vsel %vm1830_vm5, %v4419_v42, 0.0 }
 0xc47   : > { %3117 = vadd.xlane.f32.xlu1 %v3116_v43 }
 0xc49   : > { %3430 = vmatpush.bf16.msra.mxu1 %v4227_v20 }
 0xc8a   : > { %v3124_v44 = vpop.xlane.xlu2 %3123 }
 0xc8b   : > { %4420 = vrcp.f32 %v3124_v44 }
 0xc8c   : > { %v3127_v45 = vpop.xlane.xlu1 %3126 }
 0xc8d   : > { %4422 = vrcp.f32 %v3127_v45 }
 0xc91   : > { %v4421_v49 = vpop.eup %4420 }
 0xc92   : > { %v3134_v52 = vmul.f32 %v4421_v49, %v5165_v11  ;;  %v4239_v49 = vld [vmem:[%s4714_s12 + $0x38] sm:$0xff] }
 0xc93   : > { %v4423_v53 = vpop.eup %4422  ;;  %3530 = vmatpush.bf16.msrb.mxu2 %v4239_v49 }
 0xc94   : > { %v3138_v54 = vpack.c.bf16 %v3134_v52, %v3134_v52  ;;  %v3135_v55 = vmul.f32 %v4423_v53, %v5169_v19  ;;  %v3121_v56 = vpop.xlane.xlu1 %3120  ;;  %v4238_v52 = vld [vmem:[%s4714_s12 + $0x30] sm:$0xff]  ;;  %v4237_v53 = vld [vmem:[%s4714_s12 + $0x28] sm:$0xff] }
 0xc95   : > { %4424 = vrcp.f32 %v3121_v56 }
 0xc96   : > { %v3139_v2 = vpack.c.bf16 %v3135_v55, %v3135_v55  ;;  %4071 = vmatmul.msk.bf16.vlgmr.msra.gmra.mxu2 %vm1830_vm5, %v3138_v54  ;;  %v4236_v54 = vld [vmem:[%s4714_s12 + $0x20] sm:$0xff] }
 0xc97   : > { %3531 = vmatpush.bf16.msrb.mxu2 %v4238_v52  ;;  %v4390_v55 = vld [vmem:[%s947_s11] ss:$0 sm:$0xff] }
 0xc98   : > { %4072 = vmatmul.msk.bf16.vlgmr.msra.gmra.mxu3 %vm1830_vm5, %v3139_v2  ;;  %v4235_v2 = vld [vmem:[%s4714_s12 + $0x18] sm:$0xff] }
 0xc9b   : > { %v4425_v46 = vpop.eup %4424  ;;  %3532 = vmatpush.bf16.msrb.mxu2 %v4237_v53 }
 0xc9c   : > { %v3133_v57 = vmul.f32 %v4425_v46, %v5181_v34 }
 0xc9e   : > { %v3137_v58 = vpack.c.bf16 %v3133_v57, %v3133_v57 }
 0xc9f   : > { %3533 = vmatpush.bf16.msrb.mxu2 %v4236_v54 }
 0xca0   : > { %4070 = vmatmul.msk.bf16.vlgmr.msrb.gmra.mxu1 %vm1830_vm5, %v3137_v58  ;;  %v4234_v58 = vld [vmem:[%s4714_s12 + $0x10] sm:$0xff] }
 0xca3   : > { %3534 = vmatpush.bf16.msrb.mxu2 %v4235_v2 }
 0xca7   : > { %3535 = vmatpush.bf16.msrb.mxu2 %v4234_v58 }
 0xcba   : > { %v3118_v59 = vpop.xlane.xlu1 %3117 }
 0xcbb   : > { %4426 = vrcp.f32 %v3118_v59 }
 0xcc1   : > { %v4427_v11 = vpop.eup %4426 }
 0xcc2   : > { %v3132_v60 = vmul.f32 %v4427_v11, %v4419_v42  ;;  %v4389_v42 = vld [vmem:[%s5410_s2] ss:$0 sm:$0xff] }
 0xcc4   : > { %v3136_v19 = vpack.c.bf16 %v3132_v60, %v3132_v60 }
 0xcc6   : > { %4069 = vmatmul.msk.bf16.vlgmr.msrb.gmra.mxu0 %vm1830_vm5, %v3136_v19  ;;  %v4233_v19 = vld [vmem:[%s4714_s12 + $0x8] sm:$0xff] }
 0xcc7   : > { %3536 = vmatpush.bf16.msrb.mxu2 %v4233_v19 }
 0xd19   : > { %v3253_v61 = vpop.f32.mrf.mxu2 }
 0xd1a   : > { %3281 = vrot.lane.b32.xlu0 %v3253_v61, %s4487_s26 }
 0xd1b   : > { %v3272_v36 = vpop.f32.mrf.mxu3 }
 0xd1c   : > { %3285 = vrot.lane.b32.xlu2 %v3272_v36, %s4488_s17  ;;  %v4232_v36 = vld [vmem:[%s4714_s12] sm:$0xff] }
 0xd1d   : > { %v3234_v47 = vpop.f32.mrf.mxu1  ;;  %3537 = vmatpush.bf16.msrb.mxu2 %v4232_v36 }
 0xd1e   : > { %3277 = vrot.lane.b32.xlu1 %v3234_v47, %s4486_s27  ;;  %s5412_s27 = sld [smem:[#allocation4_spill]] }
 0xd21   : > { %v3255_v34 = vpop.f32.mrf.mxu2 }
 0xd23   : > { %v3274_v0 = vpop.f32.mrf.mxu3 }
 0xd24   : > { %p4146_p8 = scmp.ne.s32.totalorder %s5412_s27, 1 }
 0xd25   : > { %v3236_v1 = vpop.f32.mrf.mxu1  ;;  %s5413_s0 = sld [smem:[#allocation27_spill]] (!%p4146_p8) }
 0xd26   : > { %s5414_s18 = sld [smem:[#allocation25_spill]] (!%p4146_p8) }
 0xd27   : > { %s5415_s20 = sld [smem:[#allocation26_spill]] (!%p4146_p8) }
 0xd43   : > { %v3215_v5 = vpop.f32.mrf.mxu0 }
 0xd4b   : > { %v3217_v6 = vpop.f32.mrf.mxu0 }
 0xd76   : > { %v3286_v9 = vpop.permute.xlu2 %3285 }
 0xd8c   : > { %v3282_v10 = vpop.permute.xlu0 %3281 }
 0xd90   : > { %v3278_v8 = vpop.permute.xlu1 %3277 }
 0xd91   : > { %v3288_v62 = vsel %vm1830_vm5, %v3215_v5, %v3278_v8 }
 0xd92   : > { %v3289_v15 = vsel %vm2120_vm7, %v3288_v62, %v3282_v10 }
 0xd93   : > { %v3290_v48 = vsel %vm2122_vm8, %v3289_v15, %v3286_v9 }
 0xd94   : > { %v3295_v40 = vpack.c.bf16 %v3290_v48, %v3290_v48 }
 0xd96   : > { %4081 = vmatmul.msk.bf16.vlgmr.msra.gmra.mxu0 %vm2141_vm9, %v3295_v40 }
 0xe13   : > { %v3320_v4 = vpop.f32.mrf.mxu0 }
 0xe14   : > { %v5234_v50 = vadd.f32 %v3320_v4, %v4994_v22  ;;  %v4226_v22 = vld [vmem:[%s4705_s10 + $0x10] sm:$0xff] }
 0xe15   : > { %3431 = vmatpush.bf16.msra.mxu1 %v4226_v22  ;;  %v4391_v22 = vld [vmem:[%s955_s13] ss:$0 sm:$0xff] }
 0xe16   : > { %3327 = vadd.xlane.f32.xlu1 %v5234_v50  ;;  %v3330_v51 = vmul.f32 %v5234_v50, %v5234_v50 }
 0xe18   : > { %3331 = vadd.xlane.f32.xlu0 %v3330_v51  ;;  %v4489_v51 = vmov -1.0  }
 0xe19   : > { %3432 = vmatpush.bf16.msra.mxu1 %v4225_v21 }
 0xe1b   : > { %v3322_v12 = vpop.f32.mrf.mxu0 }
 0xe1d   : > { %3433 = vmatpush.bf16.msra.mxu1 %v4224_v23 }
 0xe89   : > { %v3328_v24 = vpop.xlane.xlu1 %3327 }
 0xe8a   : > { %v3329_v25 = vmul.f32 0.03125, %v3328_v24 }
 0xe8b   : > { %v3332_v26 = vpop.xlane.xlu0 %3331 }
 0xe8c   : > { %v3334_v27 = vmul.f32 %v3329_v25, %v3329_v25  ;;  %v3333_v28 = vmul.f32 0.03125, %v3332_v26  ;;  %v3336_v37 = vsub.f32 %v5234_v50, %v3329_v25 }
 0xe8e   : > { %v3335_v29 = vsub.f32 %v3333_v28, %v3334_v27 }
 0xe90   : > { %v3337_v30 = vadd.f32 1e-05, %v3335_v29 }
 0xe92   : > { %4428 = vrsqrt.f32 %v3337_v30  ;;  %vm3344_vm14 = vweird.f32 %v3337_v30 }
 0xe98   : > { %v4429_v63 = vpop.eup %4428 }
 0xe99   : > { %v3339_v31 = vmul.f32 %v4429_v63, %v3337_v30  ;;  %vm3345_vm13 = vweird.f32 %v4429_v63 }
 0xe9a   : > { %vm3346_vm15 = vmor %vm3344_vm14, %vm3345_vm13 }
 0xe9b   : > { %v3340_v32 = vmul.f32 %v4429_v63, %v3339_v31 }
 0xe9d   : > { %v3341_v33 = vmul.f32 0.5, %v3340_v32 }
 0xe9f   : > { %v3342_v13 = vsub.f32 1.5, %v3341_v33 }
 0xea1   : > { %v3343_v35 = vmul.f32 %v4429_v63, %v3342_v13 }
 0xea3   : > { %v3347_v39 = vsel %vm3346_vm15, %v4429_v63, %v3343_v35 }
 0xea4   : > { %v3348_v41 = vmul.f32 %v3347_v39, %v3336_v37 }
 0xea6   : > { %v3352_v43 = vmul.f32 %v4388_v38, %v3348_v41 }
 0xea8   : > { %v3356_v44 = vadd.f32 %v4389_v42, %v3352_v43 }
 0xeaa   : > { %v3373_v45 = vpack.c.bf16 %v3356_v44, %v3356_v44 }
 0xeac   : > { %3434 = vmatmul.bf16.vlgmr.msra.gmra.mxu1 %v3373_v45 }
 0xf29   : > { %v3435_v56 = vpop.f32.mrf.mxu1 }
 0xf2a   : > { %v3436_v46 = vadd.f32 %v4390_v55, %v3435_v56 }
 0xf2c   : > { %v3440_v57 = vmul.f32 0.70710677, %v3436_v46  ;;  %v3439_v16 = vmul.f32 0.5, %v3436_v46 }
 0xf2e   : > { %v3443_v59 = vand.u32 2147483647, %v3440_v57  ;;  %vm3441_vm0 = vcmp.ge.f32.partialorder %v3440_v57, 0.0 }
 0xf2f   : > { %v3442_v12 = vsel %vm3441_vm0, 1.0, %v4489_v51 }
 0xf30   : > { %v3444_v11 = vmul.f32 0.3275911, %v3443_v59  ;;  %v3456_v34 = vsub.f32 0.0, %v3443_v59 }
 0xf31   : > { %v3437_v60 = vpop.f32.mrf.mxu1 }
 0xf32   : > { %v3445_v61 = vadd.f32 1.0, %v3444_v11  ;;  %v3457_v5 = vmul.f32 %v3456_v34, %v3443_v59 }
 0xf34   : > { %4430 = vrcp.f32 %v3445_v61  ;;  %v3458_v3 = vmul.f32 1.442695, %v3457_v5 }
 0xf36   : > { %4432 = vpow2.f32 %v3458_v3 }
 0xf3a   : > { %v4431_v47 = vpop.eup %4430 }
 0xf3b   : > { %v3447_v0 = vmul.f32 1.0614054, %v4431_v47 }
 0xf3c   : > { %v4433_v48 = vpop.eup %4432 }
 0xf3d   : > { %v3448_v1 = vadd.f32 -1.4531521, %v3447_v0 }
 0xf3f   : > { %v3449_v6 = vmul.f32 %v4431_v47, %v3448_v1 }
 0xf41   : > { %v3450_v7 = vadd.f32 1.4214138, %v3449_v6 }
 0xf43   : > { %v3451_v8 = vmul.f32 %v4431_v47, %v3450_v7 }
 0xf45   : > { %v3452_v10 = vadd.f32 -0.28449672, %v3451_v8 }
 0xf47   : > { %v3453_v62 = vmul.f32 %v4431_v47, %v3452_v10 }
 0xf49   : > { %v3454_v9 = vadd.f32 0.2548296, %v3453_v62 }
 0xf4b   : > { %v3455_v15 = vmul.f32 %v4431_v47, %v3454_v9 }
 0xf4d   : > { %v3460_v40 = vmul.f32 %v4433_v48, %v3455_v15 }
 0xf4f   : > { %v3461_v4 = vsub.f32 1.0, %v3460_v40 }
 0xf51   : > { %v3462_v14 = vmul.f32 %v3461_v4, %v3442_v12 }
 0xf53   : > { %v3463_v17 = vadd.f32 1.0, %v3462_v14 }
 0xf55   : > { %v3464_v18 = vmul.f32 %v3463_v17, %v3439_v16 }
 0xf57   : > { %v3481_v20 = vpack.c.bf16 %v3464_v18, %v3464_v18 }
 0xf59   : > { %3538 = vmatmul.bf16.vlgmr.msrb.gmra.mxu2 %v3481_v20 }
 0xfdc   : > { %v3539_v21 = vpop.f32.mrf.mxu2 }
 0xfdd   : > { %v3543_v23 = vadd.f32 %v3539_v21, %v5234_v50 }
 0xfdf   : > { %v3548_v24 = vadd.f32 %v4391_v22, %v3543_v23 }
 0xfe0   : > { %3553 = sbr.rel (%p4146_p8) target bundleno = 4359 (0x1107), region = 116 }
 0xfe1   : > { %3549 = vst [vmem:[#allocation2] sm:$0xff] %v3548_v24 }
 0xfe4   : > { %v3541_v25 = vpop.f32.mrf.mxu2 }
 0xfe5   : > { %3556 = vadd.xlane.f32.xlu0 %v3548_v24  ;;  %v3559_v26 = vmul.f32 %v3548_v24, %v3548_v24  ;;  %v4247_v27 = vld [vmem:[%s5413_s0 + $0x38] sm:$0xff]  ;;  %v4246_v28 = vld [vmem:[%s5413_s0 + $0x30] sm:$0xff]  ;;  %v4245_v50 = vld [vmem:[%s5413_s0 + $0x28] sm:$0xff] }
 0xfe6   : > { %3651 = vmatpush.bf16.msra.mxu0 %v4247_v27  ;;  %v4244_v29 = vld [vmem:[%s5413_s0 + $0x20] sm:$0xff]  ;;  %v4243_v30 = vld [vmem:[%s5413_s0 + $0x18] sm:$0xff]  ;;  %v4242_v63 = vld [vmem:[%s5413_s0 + $0x10] sm:$0xff] }
 0xfe7   : > { %v4241_v31 = vld [vmem:[%s5413_s0 + $0x8] sm:$0xff]  ;;  %v4240_v33 = vld [vmem:[%s5413_s0] sm:$0xff] }
 0xfe8   : > { %v4435_v54 = vld [vmem:[%s5414_s18] ss:$0 sm:$0xff] }
 0xfe9   : > { %v4436_v2 = vld [vmem:[%s5415_s20] ss:$0 sm:$0xff] }
 0xfea   : > { %3652 = vmatpush.bf16.msra.mxu0 %v4246_v28 }
 0xfed   : > { %3560 = vadd.xlane.f32.xlu0 %v3559_v26 }
 0xfee   : > { %3653 = vmatpush.bf16.msra.mxu0 %v4245_v50 }
 0xff2   : > { %3654 = vmatpush.bf16.msra.mxu0 %v4244_v29 }
 0xff6   : > { %3655 = vmatpush.bf16.msra.mxu0 %v4243_v30 }
 0xffa   : > { %3656 = vmatpush.bf16.msra.mxu0 %v4242_v63 }
 0xffe   : > { %3657 = vmatpush.bf16.msra.mxu0 %v4241_v31 }
0x1002   : > { %3658 = vmatpush.bf16.msra.mxu0 %v4240_v33 }
0x1058   : > { %v3557_v32 = vpop.xlane.xlu0 %3556 }
0x1059   : > { %v3558_v13 = vmul.f32 0.03125, %v3557_v32 }
0x105b   : > { %v3563_v37 = vmul.f32 %v3558_v13, %v3558_v13  ;;  %v3565_v53 = vsub.f32 %v3548_v24, %v3558_v13 }
0x1060   : > { %v3561_v35 = vpop.xlane.xlu0 %3560 }
0x1061   : > { %v3562_v38 = vmul.f32 0.03125, %v3561_v35 }
0x1063   : > { %v3564_v39 = vsub.f32 %v3562_v38, %v3563_v37 }
0x1065   : > { %v3566_v41 = vadd.f32 1e-05, %v3564_v39 }
0x1067   : > { %4437 = vrsqrt.f32 %v3566_v41  ;;  %vm3573_vm2 = vweird.f32 %v3566_v41 }
0x106d   : > { %v4438_v42 = vpop.eup %4437 }
0x106e   : > { %v3568_v43 = vmul.f32 %v4438_v42, %v3566_v41  ;;  %vm3574_vm1 = vweird.f32 %v4438_v42 }
0x106f   : > { %vm3575_vm3 = vmor %vm3573_vm2, %vm3574_vm1 }
0x1070   : > { %v3569_v44 = vmul.f32 %v4438_v42, %v3568_v43 }
0x1072   : > { %v3570_v45 = vmul.f32 0.5, %v3569_v44 }
0x1074   : > { %v3571_v49 = vsub.f32 1.5, %v3570_v45 }
0x1076   : > { %v3572_v52 = vmul.f32 %v4438_v42, %v3571_v49 }
0x1078   : > { %v3576_v55 = vsel %vm3575_vm3, %v4438_v42, %v3572_v52 }
0x1079   : > { %v3577_v56 = vmul.f32 %v3576_v55, %v3565_v53 }
0x107b   : > { %v3581_v46 = vmul.f32 %v4435_v54, %v3577_v56 }
0x107d   : > { %v3585_v57 = vadd.f32 %v4436_v2, %v3581_v46 }
0x107f   : > { %v3602_v58 = vpack.c.bf16 %v3585_v57, %v3585_v57 }
0x1081   : > { %3659 = vmatmul.bf16.vlgmr.msra.gmra.mxu0 %v3602_v58 }
0x10fe   : > { %v3660_v59 = vpop.f32.mrf.mxu0 }
0x10ff   : > { %3664 = vst [vmem:[%s959_s14] sm:$0xff] %v3660_v59 }
0x1106   : > { %v3662_v11 = vpop.f32.mrf.mxu0 }
0x1107 PF: > { %s5417_s23 = sld [smem:[#allocation7_spill]] }
0x1108   : > { %s5418_s3 = sld [smem:[#allocation5_spill]] }
0x1109   : > { %s5419_s28 = sld [smem:[#allocation6_spill]] }
0x110a   : > { %s5420_s29 = sld [smem:[#allocation8_spill]] }
0x110b   : > { %s5421_s30 = sld [smem:[#allocation9_spill]] }
0x110d   : > { %s32_s4 = sadd.s32 1, %s5417_s23  }
0x110e   : > { %p29_p9 = scmp.ge.s32.totalorder %s32_s4, 6  }
0x1110   :  { %31 = sbr.rel (!%p29_p9) target bundleno = 20 (0x14), region = 194 }

</bundles_post_ra>
